<compile_context>
chip_gen: v7x
topology: tpu7x:2x2x1
jax: 0.10.0
libtpu: 0.0.40
codegen_flags: <defaults>
</compile_context>

<pallas_src>
import jax
import jax.numpy as jnp
from jax.experimental import pallas as pl
from jax.experimental.pallas import tpu as pltpu


def _round_up(x, m):
    return (x + m - 1) // m * m


def _spatial_attention_kernel(w_ref, x_ref, o_ref, avg_ref, max_ref):
    # w_ref  : (18,) f32 SMEM -- flat PyTorch conv weight [c*9 + ky*3 + kx],
    #                            c = 0 -> avg channel, c = 1 -> max channel.
    # x_ref  : (B, C, H, W) VMEM, native dtype.
    # o_ref  : (B, H, W)   VMEM, native dtype.
    # avg_ref/max_ref : (B, H+2, W+2) f32 VMEM scratch (zero-bordered halo).
    B, C, H, W = x_ref.shape

    # ---- channel mean / max over (B, H, W) slabs ----------------------------
    # Fully unrolled static loop; two independent accumulator chains break the
    # single sum/max dependency chain.
    s = [None, None]
    m = [None, None]
    for c in range(C):
        p = x_ref[:, c, :, :].astype(jnp.float32)
        k = c & 1
        if s[k] is None:
            s[k], m[k] = p, p
        else:
            s[k] = s[k] + p
            m[k] = jnp.maximum(m[k], p)
    if s[1] is None:                                   # C == 1
        ssum, smax = s[0], m[0]
    else:
        ssum, smax = s[0] + s[1], jnp.maximum(m[0], m[1])

    # ---- stash mean / max into zero-bordered scratch (== zero padding) ------
    avg_ref[...] = jnp.zeros_like(avg_ref)
    max_ref[...] = jnp.zeros_like(max_ref)
    avg_ref[:, 1:H + 1, 1:W + 1] = ssum * (1.0 / C)
    max_ref[:, 1:H + 1, 1:W + 1] = smax

    # ---- 3x3 conv over the 2-channel (avg, max) map: 9 taps x 2 scalar FMAs -
    wa = [w_ref[t] for t in range(9)]                  # hoisted SMEM reads
    wm = [w_ref[9 + t] for t in range(9)]
    acc = jnp.zeros((B, H, W), jnp.float32)
    for dy in range(3):
        for dx in range(3):
            t = dy * 3 + dx
            acc = (acc
                   + avg_ref[:, dy:dy + H, dx:dx + W] * wa[t]
                   + max_ref[:, dy:dy + H, dx:dx + W] * wm[t])

    # ---- sigmoid: exp (EUP) + approximate reciprocal (EUP vrcp) --------------
    o_ref[...] = pl.reciprocal(1.0 + jnp.exp(-acc), approx=True).astype(o_ref.dtype)


def _pick_samples_per_block(n, c, h, w, itemsize):
    """Samples per grid step.

    Largest block whose double-buffered padded VMEM footprint stays <= ~8 MiB
    (safe on v5e's 16 MiB default scoped VMEM and v7x's 64 MiB physical VMEM),
    targeting >= ~1 MiB of HBM per step, and >= 4 grid steps for the v7x
    megacore when that still leaves decently sized blocks.
    """
    sublane = {4: 8, 2: 16, 1: 32}.get(itemsize, 8)
    padded = c * _round_up(h, sublane) * _round_up(max(w, 1), 128) * itemsize  # VMEM/sample
    raw = max(1, c * h * w * itemsize)                                         # HBM/sample
    b_vmem = max(1, (8 << 20) // (2 * padded))
    b_dma = max(1, -(-(1 << 20) // raw))               # ceil(1 MiB / raw bytes)
    b = int(min(n, b_vmem, max(b_dma, -(-n // 4))))
    while n % b:                                       # avoid partial blocks
        b -= 1
    return b


def spatial_attention(x, conv1_weight):
    """SpatialAttention.forward.

    x: (N, C, H, W) in its native dtype (f32 or bf16); conv1_weight: (1, 2, 3, 3).
    Returns the attention map, shape (N, 1, H, W), in x.dtype.
    """
    N, C, H, W = x.shape
    w_flat = jnp.asarray(conv1_weight, jnp.float32).reshape(-1)     # (18,) for SMEM

    B = _pick_samples_per_block(N, C, H, W, x.dtype.itemsize)

    cost = pl.CostEstimate(
        flops=int(N * H * W * (2 * C + 39)),
        transcendentals=int(2 * N * H * W),
        bytes_accessed=int(N * C * H * W * x.dtype.itemsize
                           + N * H * W * x.dtype.itemsize + 18 * 4),
    )

    out = pl.pallas_call(
        _spatial_attention_kernel,
        out_shape=jax.ShapeDtypeStruct((N, H, W), x.dtype),
        grid=(N // B,),
        in_specs=[
            pl.BlockSpec(memory_space=pltpu.MemorySpace.SMEM),       # 18 scalar weights
            pl.BlockSpec((B, C, H, W), lambda n: (n, 0, 0, 0)),      # B samples / step
        ],
        out_specs=pl.BlockSpec((B, H, W), lambda n: (n, 0, 0)),
        scratch_shapes=[
            pltpu.VMEM((B, H + 2, W + 2), jnp.float32),              # padded avg plane
            pltpu.VMEM((B, H + 2, W + 2), jnp.float32),              # padded max plane
        ],
        compiler_params=pltpu.CompilerParams(
            dimension_semantics=("parallel",)),
        cost_estimate=cost,
    )(w_flat, x)

    # Note: for W < 128 a lane-dense (N, H*W) output slab would avoid masked
    # stores, but the output is a negligible fraction of HBM traffic here.
    return out.reshape(N, 1, H, W)


def _reference(x, w):
    # Pure-JAX reference matching the PyTorch module exactly.
    avg = jnp.mean(x, axis=1, keepdims=True)
    mx = jnp.max(x, axis=1, keepdims=True)
    m = jnp.concatenate([avg, mx], axis=1)                           # (N, 2, H, W)
    y = jax.lax.conv_general_dilated(
        m, w, window_strides=(1, 1), padding=((1, 1), (1, 1)),
        dimension_numbers=("NCHW", "OIHW", "NCHW"))
    return jax.nn.sigmoid(y)


if __name__ == "__main__":
    key = jax.random.PRNGKey(0)
    kx, kw = jax.random.split(key)

    N, C, H, W = 4, 8, 16, 16
    x = jax.random.normal(kx, (N, C, H, W), jnp.float32)
    # PyTorch default Conv2d init: U(-1/sqrt(fan_in), 1/sqrt(fan_in)), fan_in = 2*3*3.
    bound = 1.0 / (2 * 3 * 3) ** 0.5
    w = jax.random.uniform(kw, (1, 2, 3, 3), jnp.float32, -bound, bound)

    out = jax.jit(spatial_attention)(x, w)
    out = jax.block_until_ready(out)

    assert out.shape == (N, 1, H, W), out.shape
    ref = _reference(x, w)
    # Tolerance loosened slightly for pl.reciprocal(approx=True).
    assert jnp.allclose(out, ref, atol=5e-3, rtol=5e-3), \
        float(jnp.max(jnp.abs(out - ref)))
    print("KERNEL_OK")
</pallas_src>

<mosaic_0001>
module attributes {stable_mosaic.version = 11 : i64} {
  func.func @_spatial_attention_kernel(%arg0: i32, %arg1: memref<18xf32, #tpu.memory_space<smem>>, %arg2: memref<4x8x16x16xf32, #tpu.memory_space<vmem>>, %arg3: memref<4x16x16xf32, #tpu.memory_space<vmem>>, %arg4: memref<4x18x18xf32, #tpu.memory_space<vmem>>, %arg5: memref<4x18x18xf32, #tpu.memory_space<vmem>>) attributes {dimension_semantics = [#tpu.dimension_semantics<parallel>], iteration_bounds = array<i64: 1>, scalar_prefetch = 0 : i64, scratch_operands = 2 : i64, tpu.core_type = #tpu.core_type<tc>, window_params = [{transform_indices = @transform_0, window_bounds = array<i64: 18>}, {transform_indices = @transform_1, window_bounds = array<i64: 4, 8, 16, 16>}, {transform_indices = @transform_2, window_bounds = array<i64: 4, 16, 16>}]} {
    %c0 = arith.constant 0 : index
    %c0_0 = arith.constant 0 : index
    %c0_1 = arith.constant 0 : index
    %c0_2 = arith.constant 0 : index
    %0 = vector.load %arg2[%c0, %c0_0, %c0_1, %c0_2] : memref<4x8x16x16xf32, #tpu.memory_space<vmem>>, vector<4x1x16x16xf32>
    %1 = vector.shape_cast %0 : vector<4x1x16x16xf32> to vector<4x16x16xf32>
    %c0_3 = arith.constant 0 : index
    %c1 = arith.constant 1 : index
    %c0_4 = arith.constant 0 : index
    %c0_5 = arith.constant 0 : index
    %2 = vector.load %arg2[%c0_3, %c1, %c0_4, %c0_5] : memref<4x8x16x16xf32, #tpu.memory_space<vmem>>, vector<4x1x16x16xf32>
    %3 = vector.shape_cast %2 : vector<4x1x16x16xf32> to vector<4x16x16xf32>
    %c0_6 = arith.constant 0 : index
    %c2 = arith.constant 2 : index
    %c0_7 = arith.constant 0 : index
    %c0_8 = arith.constant 0 : index
    %4 = vector.load %arg2[%c0_6, %c2, %c0_7, %c0_8] : memref<4x8x16x16xf32, #tpu.memory_space<vmem>>, vector<4x1x16x16xf32>
    %5 = vector.shape_cast %4 : vector<4x1x16x16xf32> to vector<4x16x16xf32>
    %6 = arith.addf %1, %5 : vector<4x16x16xf32>
    %7 = arith.maximumf %1, %5 : vector<4x16x16xf32>
    %c0_9 = arith.constant 0 : index
    %c3 = arith.constant 3 : index
    %c0_10 = arith.constant 0 : index
    %c0_11 = arith.constant 0 : index
    %8 = vector.load %arg2[%c0_9, %c3, %c0_10, %c0_11] : memref<4x8x16x16xf32, #tpu.memory_space<vmem>>, vector<4x1x16x16xf32>
    %9 = vector.shape_cast %8 : vector<4x1x16x16xf32> to vector<4x16x16xf32>
    %10 = arith.addf %3, %9 : vector<4x16x16xf32>
    %11 = arith.maximumf %3, %9 : vector<4x16x16xf32>
    %c0_12 = arith.constant 0 : index
    %c4 = arith.constant 4 : index
    %c0_13 = arith.constant 0 : index
    %c0_14 = arith.constant 0 : index
    %12 = vector.load %arg2[%c0_12, %c4, %c0_13, %c0_14] : memref<4x8x16x16xf32, #tpu.memory_space<vmem>>, vector<4x1x16x16xf32>
    %13 = vector.shape_cast %12 : vector<4x1x16x16xf32> to vector<4x16x16xf32>
    %14 = arith.addf %6, %13 : vector<4x16x16xf32>
    %15 = arith.maximumf %7, %13 : vector<4x16x16xf32>
    %c0_15 = arith.constant 0 : index
    %c5 = arith.constant 5 : index
    %c0_16 = arith.constant 0 : index
    %c0_17 = arith.constant 0 : index
    %16 = vector.load %arg2[%c0_15, %c5, %c0_16, %c0_17] : memref<4x8x16x16xf32, #tpu.memory_space<vmem>>, vector<4x1x16x16xf32>
    %17 = vector.shape_cast %16 : vector<4x1x16x16xf32> to vector<4x16x16xf32>
    %18 = arith.addf %10, %17 : vector<4x16x16xf32>
    %19 = arith.maximumf %11, %17 : vector<4x16x16xf32>
    %c0_18 = arith.constant 0 : index
    %c6 = arith.constant 6 : index
    %c0_19 = arith.constant 0 : index
    %c0_20 = arith.constant 0 : index
    %20 = vector.load %arg2[%c0_18, %c6, %c0_19, %c0_20] : memref<4x8x16x16xf32, #tpu.memory_space<vmem>>, vector<4x1x16x16xf32>
    %21 = vector.shape_cast %20 : vector<4x1x16x16xf32> to vector<4x16x16xf32>
    %22 = arith.addf %14, %21 : vector<4x16x16xf32>
    %23 = arith.maximumf %15, %21 : vector<4x16x16xf32>
    %c0_21 = arith.constant 0 : index
    %c7 = arith.constant 7 : index
    %c0_22 = arith.constant 0 : index
    %c0_23 = arith.constant 0 : index
    %24 = vector.load %arg2[%c0_21, %c7, %c0_22, %c0_23] : memref<4x8x16x16xf32, #tpu.memory_space<vmem>>, vector<4x1x16x16xf32>
    %25 = vector.shape_cast %24 : vector<4x1x16x16xf32> to vector<4x16x16xf32>
    %26 = arith.addf %18, %25 : vector<4x16x16xf32>
    %27 = arith.maximumf %19, %25 : vector<4x16x16xf32>
    %28 = arith.addf %22, %26 : vector<4x16x16xf32>
    %29 = arith.maximumf %23, %27 : vector<4x16x16xf32>
    %cst = arith.constant 0.000000e+00 : f32
    %30 = vector.broadcast %cst : f32 to vector<4x18x18xf32>
    %c0_24 = arith.constant 0 : index
    %c0_25 = arith.constant 0 : index
    %c0_26 = arith.constant 0 : index
    %31 = vector.load %arg4[%c0_24, %c0_25, %c0_26] : memref<4x18x18xf32, #tpu.memory_space<vmem>>, vector<4x18x18xf32>
    tpu.vector_store %arg4[%c0_24, %c0_25, %c0_26], %30 {strides = array<i32>} : memref<4x18x18xf32, #tpu.memory_space<vmem>>, vector<4x18x18xf32>,
    %cst_27 = arith.constant 0.000000e+00 : f32
    %32 = vector.broadcast %cst_27 : f32 to vector<4x18x18xf32>
    %c0_28 = arith.constant 0 : index
    %c0_29 = arith.constant 0 : index
    %c0_30 = arith.constant 0 : index
    %33 = vector.load %arg5[%c0_28, %c0_29, %c0_30] : memref<4x18x18xf32, #tpu.memory_space<vmem>>, vector<4x18x18xf32>
    tpu.vector_store %arg5[%c0_28, %c0_29, %c0_30], %32 {strides = array<i32>} : memref<4x18x18xf32, #tpu.memory_space<vmem>>, vector<4x18x18xf32>,
    %cst_31 = arith.constant 1.250000e-01 : f32
    %34 = vector.broadcast %cst_31 : f32 to vector<4x16x16xf32>
    %35 = arith.mulf %28, %34 : vector<4x16x16xf32>
    %c0_32 = arith.constant 0 : index
    %c1_33 = arith.constant 1 : index
    %c1_34 = arith.constant 1 : index
    %36 = vector.load %arg4[%c0_32, %c1_33, %c1_34] : memref<4x18x18xf32, #tpu.memory_space<vmem>>, vector<4x16x16xf32>
    tpu.vector_store %arg4[%c0_32, %c1_33, %c1_34], %35 {strides = array<i32>} : memref<4x18x18xf32, #tpu.memory_space<vmem>>, vector<4x16x16xf32>,
    %c0_35 = arith.constant 0 : index
    %c1_36 = arith.constant 1 : index
    %c1_37 = arith.constant 1 : index
    %37 = vector.load %arg5[%c0_35, %c1_36, %c1_37] : memref<4x18x18xf32, #tpu.memory_space<vmem>>, vector<4x16x16xf32>
    tpu.vector_store %arg5[%c0_35, %c1_36, %c1_37], %29 {strides = array<i32>} : memref<4x18x18xf32, #tpu.memory_space<vmem>>, vector<4x16x16xf32>,
    %c0_38 = arith.constant 0 : index
    %38 = memref.load %arg1[%c0_38] : memref<18xf32, #tpu.memory_space<smem>>
    %c1_39 = arith.constant 1 : index
    %39 = memref.load %arg1[%c1_39] : memref<18xf32, #tpu.memory_space<smem>>
    %c2_40 = arith.constant 2 : index
    %40 = memref.load %arg1[%c2_40] : memref<18xf32, #tpu.memory_space<smem>>
    %c3_41 = arith.constant 3 : index
    %41 = memref.load %arg1[%c3_41] : memref<18xf32, #tpu.memory_space<smem>>
    %c4_42 = arith.constant 4 : index
    %42 = memref.load %arg1[%c4_42] : memref<18xf32, #tpu.memory_space<smem>>
    %c5_43 = arith.constant 5 : index
    %43 = memref.load %arg1[%c5_43] : memref<18xf32, #tpu.memory_space<smem>>
    %c6_44 = arith.constant 6 : index
    %44 = memref.load %arg1[%c6_44] : memref<18xf32, #tpu.memory_space<smem>>
    %c7_45 = arith.constant 7 : index
    %45 = memref.load %arg1[%c7_45] : memref<18xf32, #tpu.memory_space<smem>>
    %c8 = arith.constant 8 : index
    %46 = memref.load %arg1[%c8] : memref<18xf32, #tpu.memory_space<smem>>
    %c9 = arith.constant 9 : index
    %47 = memref.load %arg1[%c9] : memref<18xf32, #tpu.memory_space<smem>>
    %c10 = arith.constant 10 : index
    %48 = memref.load %arg1[%c10] : memref<18xf32, #tpu.memory_space<smem>>
    %c11 = arith.constant 11 : index
    %49 = memref.load %arg1[%c11] : memref<18xf32, #tpu.memory_space<smem>>
    %c12 = arith.constant 12 : index
    %50 = memref.load %arg1[%c12] : memref<18xf32, #tpu.memory_space<smem>>
    %c13 = arith.constant 13 : index
    %51 = memref.load %arg1[%c13] : memref<18xf32, #tpu.memory_space<smem>>
    %c14 = arith.constant 14 : index
    %52 = memref.load %arg1[%c14] : memref<18xf32, #tpu.memory_space<smem>>
    %c15 = arith.constant 15 : index
    %53 = memref.load %arg1[%c15] : memref<18xf32, #tpu.memory_space<smem>>
    %c16 = arith.constant 16 : index
    %54 = memref.load %arg1[%c16] : memref<18xf32, #tpu.memory_space<smem>>
    %c17 = arith.constant 17 : index
    %55 = memref.load %arg1[%c17] : memref<18xf32, #tpu.memory_space<smem>>
    %cst_46 = arith.constant 0.000000e+00 : f32
    %56 = vector.broadcast %cst_46 : f32 to vector<4x16x16xf32>
    %c0_47 = arith.constant 0 : index
    %c0_48 = arith.constant 0 : index
    %c0_49 = arith.constant 0 : index
    %57 = vector.load %arg4[%c0_47, %c0_48, %c0_49] : memref<4x18x18xf32, #tpu.memory_space<vmem>>, vector<4x16x16xf32>
    %58 = vector.broadcast %38 : f32 to vector<4x16x16xf32>
    %59 = arith.mulf %57, %58 : vector<4x16x16xf32>
    %60 = arith.addf %56, %59 : vector<4x16x16xf32>
    %c0_50 = arith.constant 0 : index
    %c0_51 = arith.constant 0 : index
    %c0_52 = arith.constant 0 : index
    %61 = vector.load %arg5[%c0_50, %c0_51, %c0_52] : memref<4x18x18xf32, #tpu.memory_space<vmem>>, vector<4x16x16xf32>
    %62 = vector.broadcast %47 : f32 to vector<4x16x16xf32>
    %63 = arith.mulf %61, %62 : vector<4x16x16xf32>
    %64 = arith.addf %60, %63 : vector<4x16x16xf32>
    %c0_53 = arith.constant 0 : index
    %c0_54 = arith.constant 0 : index
    %c1_55 = arith.constant 1 : index
    %65 = vector.load %arg4[%c0_53, %c0_54, %c1_55] : memref<4x18x18xf32, #tpu.memory_space<vmem>>, vector<4x16x16xf32>
    %66 = vector.broadcast %39 : f32 to vector<4x16x16xf32>
    %67 = arith.mulf %65, %66 : vector<4x16x16xf32>
    %68 = arith.addf %64, %67 : vector<4x16x16xf32>
    %c0_56 = arith.constant 0 : index
    %c0_57 = arith.constant 0 : index
    %c1_58 = arith.constant 1 : index
    %69 = vector.load %arg5[%c0_56, %c0_57, %c1_58] : memref<4x18x18xf32, #tpu.memory_space<vmem>>, vector<4x16x16xf32>
    %70 = vector.broadcast %48 : f32 to vector<4x16x16xf32>
    %71 = arith.mulf %69, %70 : vector<4x16x16xf32>
    %72 = arith.addf %68, %71 : vector<4x16x16xf32>
    %c0_59 = arith.constant 0 : index
    %c0_60 = arith.constant 0 : index
    %c2_61 = arith.constant 2 : index
    %73 = vector.load %arg4[%c0_59, %c0_60, %c2_61] : memref<4x18x18xf32, #tpu.memory_space<vmem>>, vector<4x16x16xf32>
    %74 = vector.broadcast %40 : f32 to vector<4x16x16xf32>
    %75 = arith.mulf %73, %74 : vector<4x16x16xf32>
    %76 = arith.addf %72, %75 : vector<4x16x16xf32>
    %c0_62 = arith.constant 0 : index
    %c0_63 = arith.constant 0 : index
    %c2_64 = arith.constant 2 : index
    %77 = vector.load %arg5[%c0_62, %c0_63, %c2_64] : memref<4x18x18xf32, #tpu.memory_space<vmem>>, vector<4x16x16xf32>
    %78 = vector.broadcast %49 : f32 to vector<4x16x16xf32>
    %79 = arith.mulf %77, %78 : vector<4x16x16xf32>
    %80 = arith.addf %76, %79 : vector<4x16x16xf32>
    %c0_65 = arith.constant 0 : index
    %c1_66 = arith.constant 1 : index
    %c0_67 = arith.constant 0 : index
    %81 = vector.load %arg4[%c0_65, %c1_66, %c0_67] : memref<4x18x18xf32, #tpu.memory_space<vmem>>, vector<4x16x16xf32>
    %82 = vector.broadcast %41 : f32 to vector<4x16x16xf32>
    %83 = arith.mulf %81, %82 : vector<4x16x16xf32>
    %84 = arith.addf %80, %83 : vector<4x16x16xf32>
    %c0_68 = arith.constant 0 : index
    %c1_69 = arith.constant 1 : index
    %c0_70 = arith.constant 0 : index
    %85 = vector.load %arg5[%c0_68, %c1_69, %c0_70] : memref<4x18x18xf32, #tpu.memory_space<vmem>>, vector<4x16x16xf32>
    %86 = vector.broadcast %50 : f32 to vector<4x16x16xf32>
    %87 = arith.mulf %85, %86 : vector<4x16x16xf32>
    %88 = arith.addf %84, %87 : vector<4x16x16xf32>
    %c0_71 = arith.constant 0 : index
    %c1_72 = arith.constant 1 : index
    %c1_73 = arith.constant 1 : index
    %89 = vector.load %arg4[%c0_71, %c1_72, %c1_73] : memref<4x18x18xf32, #tpu.memory_space<vmem>>, vector<4x16x16xf32>
    %90 = vector.broadcast %42 : f32 to vector<4x16x16xf32>
    %91 = arith.mulf %89, %90 : vector<4x16x16xf32>
    %92 = arith.addf %88, %91 : vector<4x16x16xf32>
    %c0_74 = arith.constant 0 : index
    %c1_75 = arith.constant 1 : index
    %c1_76 = arith.constant 1 : index
    %93 = vector.load %arg5[%c0_74, %c1_75, %c1_76] : memref<4x18x18xf32, #tpu.memory_space<vmem>>, vector<4x16x16xf32>
    %94 = vector.broadcast %51 : f32 to vector<4x16x16xf32>
    %95 = arith.mulf %93, %94 : vector<4x16x16xf32>
    %96 = arith.addf %92, %95 : vector<4x16x16xf32>
    %c0_77 = arith.constant 0 : index
    %c1_78 = arith.constant 1 : index
    %c2_79 = arith.constant 2 : index
    %97 = vector.load %arg4[%c0_77, %c1_78, %c2_79] : memref<4x18x18xf32, #tpu.memory_space<vmem>>, vector<4x16x16xf32>
    %98 = vector.broadcast %43 : f32 to vector<4x16x16xf32>
    %99 = arith.mulf %97, %98 : vector<4x16x16xf32>
    %100 = arith.addf %96, %99 : vector<4x16x16xf32>
    %c0_80 = arith.constant 0 : index
    %c1_81 = arith.constant 1 : index
    %c2_82 = arith.constant 2 : index
    %101 = vector.load %arg5[%c0_80, %c1_81, %c2_82] : memref<4x18x18xf32, #tpu.memory_space<vmem>>, vector<4x16x16xf32>
    %102 = vector.broadcast %52 : f32 to vector<4x16x16xf32>
    %103 = arith.mulf %101, %102 : vector<4x16x16xf32>
    %104 = arith.addf %100, %103 : vector<4x16x16xf32>
    %c0_83 = arith.constant 0 : index
    %c2_84 = arith.constant 2 : index
    %c0_85 = arith.constant 0 : index
    %105 = vector.load %arg4[%c0_83, %c2_84, %c0_85] : memref<4x18x18xf32, #tpu.memory_space<vmem>>, vector<4x16x16xf32>
    %106 = vector.broadcast %44 : f32 to vector<4x16x16xf32>
    %107 = arith.mulf %105, %106 : vector<4x16x16xf32>
    %108 = arith.addf %104, %107 : vector<4x16x16xf32>
    %c0_86 = arith.constant 0 : index
    %c2_87 = arith.constant 2 : index
    %c0_88 = arith.constant 0 : index
    %109 = vector.load %arg5[%c0_86, %c2_87, %c0_88] : memref<4x18x18xf32, #tpu.memory_space<vmem>>, vector<4x16x16xf32>
    %110 = vector.broadcast %53 : f32 to vector<4x16x16xf32>
    %111 = arith.mulf %109, %110 : vector<4x16x16xf32>
    %112 = arith.addf %108, %111 : vector<4x16x16xf32>
    %c0_89 = arith.constant 0 : index
    %c2_90 = arith.constant 2 : index
    %c1_91 = arith.constant 1 : index
    %113 = vector.load %arg4[%c0_89, %c2_90, %c1_91] : memref<4x18x18xf32, #tpu.memory_space<vmem>>, vector<4x16x16xf32>
    %114 = vector.broadcast %45 : f32 to vector<4x16x16xf32>
    %115 = arith.mulf %113, %114 : vector<4x16x16xf32>
    %116 = arith.addf %112, %115 : vector<4x16x16xf32>
    %c0_92 = arith.constant 0 : index
    %c2_93 = arith.constant 2 : index
    %c1_94 = arith.constant 1 : index
    %117 = vector.load %arg5[%c0_92, %c2_93, %c1_94] : memref<4x18x18xf32, #tpu.memory_space<vmem>>, vector<4x16x16xf32>
    %118 = vector.broadcast %54 : f32 to vector<4x16x16xf32>
    %119 = arith.mulf %117, %118 : vector<4x16x16xf32>
    %120 = arith.addf %116, %119 : vector<4x16x16xf32>
    %c0_95 = arith.constant 0 : index
    %c2_96 = arith.constant 2 : index
    %c2_97 = arith.constant 2 : index
    %121 = vector.load %arg4[%c0_95, %c2_96, %c2_97] : memref<4x18x18xf32, #tpu.memory_space<vmem>>, vector<4x16x16xf32>
    %122 = vector.broadcast %46 : f32 to vector<4x16x16xf32>
    %123 = arith.mulf %121, %122 : vector<4x16x16xf32>
    %124 = arith.addf %120, %123 : vector<4x16x16xf32>
    %c0_98 = arith.constant 0 : index
    %c2_99 = arith.constant 2 : index
    %c2_100 = arith.constant 2 : index
    %125 = vector.load %arg5[%c0_98, %c2_99, %c2_100] : memref<4x18x18xf32, #tpu.memory_space<vmem>>, vector<4x16x16xf32>
    %126 = vector.broadcast %55 : f32 to vector<4x16x16xf32>
    %127 = arith.mulf %125, %126 : vector<4x16x16xf32>
    %128 = arith.addf %124, %127 : vector<4x16x16xf32>
    %cst_101 = arith.constant 0.000000e+00 : f32
    %129 = vector.broadcast %cst_101 : f32 to vector<4x16x16xf32>
    %130 = arith.subf %129, %128 : vector<4x16x16xf32>
    %131 = math.exp %130 : vector<4x16x16xf32>
    %cst_102 = arith.constant 1.000000e+00 : f32
    %132 = vector.broadcast %cst_102 : f32 to vector<4x16x16xf32>
    %133 = arith.addf %132, %131 : vector<4x16x16xf32>
    %134 = tpu.reciprocal %133 {approx = true} : vector<4x16x16xf32> -> vector<4x16x16xf32>
    %c0_103 = arith.constant 0 : index
    %c0_104 = arith.constant 0 : index
    %c0_105 = arith.constant 0 : index
    %135 = vector.load %arg3[%c0_103, %c0_104, %c0_105] : memref<4x16x16xf32, #tpu.memory_space<vmem>>, vector<4x16x16xf32>
    tpu.vector_store %arg3[%c0_103, %c0_104, %c0_105], %134 {strides = array<i32>} : memref<4x16x16xf32, #tpu.memory_space<vmem>>, vector<4x16x16xf32>,
    return
  }
  func.func @transform_0(%arg0: i32) -> i32 {
    %c0_i32 = arith.constant 0 : i32
    %c0_i32_0 = arith.constant 0 : i32
    return %c0_i32 : i32
  }
  func.func @transform_1(%arg0: i32) -> (i32, i32, i32, i32) {
    %c0_i32 = arith.constant 0 : i32
    %c0_i32_0 = arith.constant 0 : i32
    %c0_i32_1 = arith.constant 0 : i32
    %c0_i32_2 = arith.constant 0 : i32
    return %arg0, %c0_i32, %c0_i32_0, %c0_i32_1 : i32, i32, i32, i32
  }
  func.func @transform_2(%arg0: i32) -> (i32, i32, i32) {
    %c0_i32 = arith.constant 0 : i32
    %c0_i32_0 = arith.constant 0 : i32
    %c0_i32_1 = arith.constant 0 : i32
    return %arg0, %c0_i32, %c0_i32_0 : i32, i32, i32
  }
}

</mosaic_0001>

<bundles_post_ra>
// kernel: spatial_attention.1
= control target key start
LH: loop header
LB: loop body
LE: loop exit
PB: predicated region body
PF: predicated region fallthrough
CT: control target
= control target key end

     0   :  { %7 = vsyncpa [#allocation7], 0  ;;  %s2048_s0 = inlined_call_operand.vmem [shape: f32[18], index: 0, kind: input, shape index: {}]   ;;  %s2049_s1 = inlined_call_operand.hbm [shape: f32[4,8,16,16], index: 1, kind: input, shape index: {}]   ;;  %s2050_s2 = inlined_call_operand.hbm [shape: f32[4,16,16], index: 2, kind: output, shape index: {}]  }
   0x1   :  { %8 = vsyncpa [#allocation5], 0 }
   0x2   :  { %9 = vsyncpa [#allocation6], 0  ;;  %s16_s11 = sshll.u32 %s2048_s0, 4  ;;  %s17_s11 = int_to_ptr.vmem [resolvable:$true] %s16_s11 }
   0x3   :  { %s1218_s12 = scalar_lea.vmem %s17_s11, 16  ;;  %p1223_p1 = scmp.lt.s32.totalorder %s17_s11, %s17_s11 }
   0x4   :  { %p1219_p0 = scmp.ne.s32.totalorder %s17_s11, %s1218_s12  ;;  %p1224_p2 = scmp.lt.s32.totalorder %s1218_s12, %s1218_s12 }
   0x6   :  { %p1225_p3 = por %p1224_p2, %p1223_p1 }
   0x8   :  { %p1226_p4 = pnand %p1225_p3, %p1219_p0 }
   0xa   :  { %1229 = shalt.err (!%p1226_p4)
}
   0xb   :  { %s1280_s13 = smov [#allocation4]   ;;  %s1281_s14 = smov [#allocation8]  }
   0xc   :  { %19 = dma.vmem_to_smem %s17_s11, 16, %s1280_s13, [#allocation7]  }
   0xd   :  { %s25_s15 = sshll.u32 %s1281_s14, 4  ;;  %s1230_s18 = scalar_lea.hbm %s2049_s1, 8192  ;;  %s26_s15 = int_to_ptr.vmem [resolvable:$true] %s25_s15 }
   0xe   :  { %p1231_p5 = scmp.ne.s32.totalorder %s2049_s1, %s1230_s18  ;;  %p1234_p6 = scmp.lt.u32.totalorder %s1230_s18, %s2049_s1 }
  0x10   :  { %p1236_p7 = pnand %p1234_p6, %p1231_p5 }
  0x12   :  { %1239 = shalt.err (!%p1236_p7)
}
  0x13   :  { %s1240_s22 = scalar_lea.vmem %s26_s15, 8192  ;;  %p1245_p9 = scmp.lt.s32.totalorder %s26_s15, %s26_s15 }
  0x14   :  { %p1241_p8 = scmp.ne.s32.totalorder %s26_s15, %s1240_s22  ;;  %p1246_p10 = scmp.lt.s32.totalorder %s1240_s22, %s1240_s22 }
  0x16   :  { %p1247_p11 = por %p1246_p10, %p1245_p9 }
  0x18   :  { %p1248_p12 = pnand %p1247_p11, %p1241_p8 }
  0x1a   :  { %1251 = shalt.err (!%p1248_p12)
}
  0x1b   :  { %s1282_s23 = smov 128   ;;  %s1283_s24 = smov 8  }
  0x1c   :  { %31 = dma.hbm_to_vmem [thread:$0]  %s2049_s1, 8192, %s26_s15, [#allocation5], %s1282_s23, %s1282_s23, %s1283_s24  }
  0x1d   :  { %1274 = dma.done.wait [#allocation7], 16  }
  0x1e   :  { %1275 = vsyncadd [#allocation7], 4294967280 }
  0x1f   :  { %1276 = dma.done.wait [#allocation5], 8192  }
  0x20   :  { %1277 = vsyncadd [#allocation5], 4294959104 }
  0x21   :  { %38 = sfence }
  0x22   :  { %v1322_v0 = vld [vmem:[#allocation8 + $0x80] sm:$0xff]  ;;  %v1324_v1 = vld [vmem:[#allocation8 + $0x90] sm:$0xff]  ;;  %vm222_vm0 = vcmask 146432   ;;  %v1284_v7 = vmov 0.0   ;;  %vm225_vm1 = vcmask 140288   ;;  %v1381_v24 = vld [vmem:[#allocation8 + $0x88] sm:$0xff] }
  0x23   :  { %v1326_v2 = vld [vmem:[#allocation8 + $0xa0] sm:$0xff]  ;;  %v1330_v4 = vld [vmem:[#allocation8 + $0xb0] sm:$0xff]  ;;  %227 = vst.msk [vmem:[#allocation2 + $0x18] sm:$0xff] %vm222_vm0, %v1284_v7  ;;  %228 = vst.msk [vmem:[#allocation2 + $0x20] sm:$0xff] %vm222_vm0, %v1284_v7  ;;  %s1285_s1 = smov 1   ;;  %vm288_vm2 = vcmask 138248  }
  0x24   :  { %v67_v3 = vadd.f32 %v1326_v2, %v1322_v0  ;;  %v1332_v5 = vld [vmem:[#allocation8 + $0xc0] sm:$0xff]  ;;  %v1334_v6 = vld [vmem:[#allocation8 + $0xd0] sm:$0xff]  ;;  %223 = vst.msk [vmem:[#allocation2] sm:$0xff] %vm222_vm0, %v1284_v7  ;;  %224 = vst.msk [vmem:[#allocation2 + $0x8] sm:$0xff] %vm222_vm0, %v1284_v7  ;;  %v92_v8 = vadd.f32 %v1330_v4, %v1324_v1  ;;  %s1169_s27 = sld [smem:[#allocation4 + $0xa]]  ;;  %s1168_s28 = sld [smem:[#allocation4 + $0x9]] }
  0x25   :  { %230 = vst.msk [vmem:[#allocation2 + $0x30] sm:$0xff] %vm222_vm0, %v1284_v7  ;;  %231 = vst.msk [vmem:[#allocation2 + $0x38] sm:$0xff] %vm222_vm0, %v1284_v7  ;;  %v1354_v9 = vld [vmem:[#allocation8 + $0xe0] sm:$0xff]  ;;  %v1356_v10 = vld [vmem:[#allocation8 + $0xf0] sm:$0xff]  ;;  %s337_s29 = sld [smem:[#allocation4]]  ;;  %s1286_s30 = smov 127  }
  0x26   :  { %233 = vst.msk [vmem:[#allocation2 + $0x48] sm:$0xff] %vm222_vm0, %v1284_v7  ;;  %234 = vst.msk [vmem:[#allocation2 + $0x50] sm:$0xff] %vm222_vm0, %v1284_v7  ;;  %v1358_v11 = vld [vmem:[#allocation8] sm:$0xff]  ;;  %v117_v12 = vadd.f32 %v1332_v5, %v67_v3  ;;  %v1361_v13 = vld [vmem:[#allocation8 + $0x10] sm:$0xff]  ;;  %v142_v16 = vadd.f32 %v1334_v6, %v92_v8  ;;  %s1170_s3 = sld [smem:[#allocation4 + $0xb]]  ;;  %s1287_s4 = smov 126  }
  0x27   :  { %236 = vst.msk [vmem:[#allocation3] sm:$0xff] %vm222_vm0, %v1284_v7  ;;  %237 = vst.msk [vmem:[#allocation3 + $0x8] sm:$0xff] %vm222_vm0, %v1284_v7  ;;  %v1363_v14 = vld [vmem:[#allocation8 + $0x20] sm:$0xff]  ;;  %v1365_v15 = vld [vmem:[#allocation8 + $0x30] sm:$0xff]  ;;  %s1172_s5 = sld [smem:[#allocation4 + $0xd]]  ;;  %s1160_s6 = sld [smem:[#allocation4 + $0x1]] }
  0x28   :  { %239 = vst.msk [vmem:[#allocation3 + $0x18] sm:$0xff] %vm222_vm0, %v1284_v7  ;;  %240 = vst.msk [vmem:[#allocation3 + $0x20] sm:$0xff] %vm222_vm0, %v1284_v7  ;;  %v65_v17 = vadd.f32 %v1363_v14, %v1358_v11  ;;  %v90_v18 = vadd.f32 %v1365_v15, %v1361_v13  ;;  %v1372_v19 = vld [vmem:[#allocation8 + $0x40] sm:$0xff]  ;;  %v1374_v20 = vld [vmem:[#allocation8 + $0x50] sm:$0xff]  ;;  %v167_v22 = vadd.f32 %v1354_v9, %v117_v12  ;;  %s1161_s7 = sld [smem:[#allocation4 + $0x2]]  ;;  %s1163_s8 = sld [smem:[#allocation4 + $0x4]] }
  0x29   :  { %242 = vst.msk [vmem:[#allocation3 + $0x30] sm:$0xff] %vm222_vm0, %v1284_v7  ;;  %243 = vst.msk [vmem:[#allocation3 + $0x38] sm:$0xff] %vm222_vm0, %v1284_v7  ;;  %v1376_v21 = vld [vmem:[#allocation8 + $0x60] sm:$0xff]  ;;  %v1379_v23 = vld [vmem:[#allocation8 + $0x70] sm:$0xff]  ;;  %v192_v26 = vadd.f32 %v1356_v10, %v142_v16  ;;  %v73_v63 = vmax.f32 %v1358_v11, %v1363_v14  ;;  %s1164_s9 = sld [smem:[#allocation4 + $0x5]]  ;;  %s1173_s10 = sld [smem:[#allocation4 + $0xe]] }
  0x2a   :  { %245 = vst.msk [vmem:[#allocation3 + $0x48] sm:$0xff] %vm222_vm0, %v1284_v7  ;;  %246 = vst.msk [vmem:[#allocation3 + $0x50] sm:$0xff] %vm222_vm0, %v1284_v7  ;;  %v1383_v25 = vld [vmem:[#allocation8 + $0x98] sm:$0xff]  ;;  %v115_v27 = vadd.f32 %v1372_v19, %v65_v17  ;;  %v140_v28 = vadd.f32 %v1374_v20, %v90_v18  ;;  %v1388_v29 = vld [vmem:[#allocation8 + $0xa8] sm:$0xff]  ;;  %s1166_s11 = sld [smem:[#allocation4 + $0x7]]  ;;  %s1175_s12 = sld [smem:[#allocation4 + $0x10]] }
  0x2b   :  { %229 = vst.msk [vmem:[#allocation2 + $0x28] sm:$0x3] %vm225_vm1, %v1284_v7  ;;  %226 = vst.msk [vmem:[#allocation2 + $0x10] sm:$0x3] %vm225_vm1, %v1284_v7  ;;  %v1390_v30 = vld [vmem:[#allocation8 + $0xb8] sm:$0xff]  ;;  %v1392_v31 = vld [vmem:[#allocation8 + $0xc8] sm:$0xff]  ;;  %v68_v32 = vadd.f32 %v1388_v29, %v1381_v24  ;;  %v208_v37 = vadd.f32 %v192_v26, %v167_v22 }
  0x2c   :  { %232 = vst.msk [vmem:[#allocation2 + $0x40] sm:$0x3] %vm225_vm1, %v1284_v7  ;;  %235 = vst.msk [vmem:[#allocation2 + $0x58] sm:$0x3] %vm225_vm1, %v1284_v7  ;;  %v93_v33 = vadd.f32 %v1390_v30, %v1383_v25  ;;  %v1398_v34 = vld [vmem:[#allocation8 + $0xd8] sm:$0xff]  ;;  %v1400_v35 = vld [vmem:[#allocation8 + $0xe8] sm:$0xff]  ;;  %v165_v38 = vadd.f32 %v1376_v21, %v115_v27  ;;  %v190_v39 = vadd.f32 %v1379_v23, %v140_v28 }
  0x2d   :  { %238 = vst.msk [vmem:[#allocation3 + $0x10] sm:$0x3] %vm225_vm1, %v1284_v7  ;;  %241 = vst.msk [vmem:[#allocation3 + $0x28] sm:$0x3] %vm225_vm1, %v1284_v7  ;;  %v1402_v36 = vld [vmem:[#allocation8 + $0xf8] sm:$0xff]  ;;  %v1406_v40 = vld [vmem:[#allocation8 + $0x8] sm:$0xff]  ;;  %v118_v43 = vadd.f32 %v1392_v31, %v68_v32  ;;  %v98_v32 = vmax.f32 %v1361_v13, %v1365_v15 }
  0x2e   :  { %244 = vst.msk [vmem:[#allocation3 + $0x40] sm:$0x3] %vm225_vm1, %v1284_v7  ;;  %247 = vst.msk [vmem:[#allocation3 + $0x58] sm:$0x3] %vm225_vm1, %v1284_v7  ;;  %v1408_v41 = vld [vmem:[#allocation8 + $0x18] sm:$0xff]  ;;  %v1410_v42 = vld [vmem:[#allocation8 + $0x28] sm:$0xff]  ;;  %v143_v44 = vadd.f32 %v1398_v34, %v93_v33  ;;  %v206_v51 = vadd.f32 %v190_v39, %v165_v38 }
  0x2f   :  { %v66_v45 = vadd.f32 %v1410_v42, %v1406_v40  ;;  %v1416_v46 = vld [vmem:[#allocation8 + $0x38] sm:$0xff]  ;;  %v108_v47 = vld [vmem:[#allocation8 + $0x48] sm:$0xff]  ;;  %v250_v50 = vmul.f32 0.125, %v208_v37  ;;  %v168_v57 = vadd.f32 %v1400_v35, %v118_v43  ;;  %v1457_v26 = vld [vmem:[#allocation8 + $0x100] sm:$0xff]  ;;  %v74_v28 = vmax.f32 %v1406_v40, %v1410_v42  ;;  %s1167_s13 = sld [smem:[#allocation4 + $0x8]]  ;;  %s1176_s14 = sld [smem:[#allocation4 + $0x11]] }
  0x30   :  { %v1418_v48 = vld [vmem:[#allocation8 + $0x58] sm:$0xff]  ;;  %v91_v52 = vadd.f32 %v1416_v46, %v1408_v41  ;;  %v1424_v53 = vld [vmem:[#allocation8 + $0x68] sm:$0xff]  ;;  %v193_v58 = vadd.f32 %v1402_v36, %v143_v44  ;;  %v248_v3 = vmul.f32 0.125, %v206_v51  ;;  %v1459_v27 = vld [vmem:[#allocation8 + $0x110] sm:$0xff]  ;;  %v99_v40 = vmax.f32 %v1408_v41, %v1416_v46  ;;  %s1162_s15 = sld [smem:[#allocation4 + $0x3]]  ;;  %s1171_s16 = sld [smem:[#allocation4 + $0xc]] }
  0x31   :  { %v1426_v54 = vld [vmem:[#allocation8 + $0x78] sm:$0xff]  ;;  %v1428_v55 = vld [vmem:[#allocation8 + $0x108] sm:$0xff]  ;;  %v116_v59 = vadd.f32 %v108_v47, %v66_v45  ;;  %268 = vrot.lane.b32.xlu1 %v250_v50, %s1285_s1  ;;  %v1469_v39 = vld [vmem:[#allocation8 + $0x120] sm:$0xff]  ;;  %s1165_s17 = sld [smem:[#allocation4 + $0x6]]  ;;  %s1174_s18 = sld [smem:[#allocation4 + $0xf]]  ;;  %vm1133_vm3 = vcmask 130048  }
  0x32   :  { %v1434_v60 = vld [vmem:[#allocation8 + $0x118] sm:$0xff]  ;;  %v1436_v61 = vld [vmem:[#allocation8 + $0x128] sm:$0xff]  ;;  %v141_v7 = vadd.f32 %v1418_v48, %v91_v52  ;;  %v209_v22 = vadd.f32 %v193_v58, %v168_v57  ;;  %264 = vrot.lane.b32.xlu0 %v248_v3, %s1285_s1  ;;  %v1471_v43 = vld [vmem:[#allocation8 + $0x130] sm:$0xff]  ;;  %v69_v13 = vadd.f32 %v1469_v39, %v1457_v26  ;;  %v1488_v52 = vmax.f32 %v73_v63, %v1372_v19  ;;  %s1288_s19 = smov [#allocation9]  }
  0x33   :  { %v1438_v62 = vld [vmem:[#allocation8 + $0x138] sm:$0xff]  ;;  %v70_v8 = vadd.f32 %v1436_v61, %v1428_v55  ;;  %v1448_v16 = vld [vmem:[#allocation8 + $0x148] sm:$0xff]  ;;  %v166_v11 = vadd.f32 %v1424_v53, %v116_v59  ;;  %v1473_v44 = vld [vmem:[#allocation8 + $0x140] sm:$0xff]  ;;  %v94_v15 = vadd.f32 %v1471_v43, %v1459_v27  ;;  %s1147_s20 = sshll.u32 %s1288_s19, 4  ;;  %s1148_s20 = int_to_ptr.vmem [resolvable:$true] %s1147_s20 }
  0x34   :  { %v95_v12 = vadd.f32 %v1438_v62, %v1434_v60  ;;  %v1450_v17 = vld [vmem:[#allocation8 + $0x158] sm:$0xff]  ;;  %v1452_v18 = vld [vmem:[#allocation8 + $0x168] sm:$0xff]  ;;  %v191_v33 = vadd.f32 %v1426_v54, %v141_v7  ;;  %v251_v42 = vmul.f32 0.125, %v209_v22  ;;  %v1481_v45 = vld [vmem:[#allocation8 + $0x150] sm:$0xff]  ;;  %v76_v7 = vmax.f32 %v1381_v24, %v1388_v29  ;;  %s1252_s0 = scalar_lea.vmem %s1148_s20, 1024  ;;  %p1257_p0 = scmp.lt.s32.totalorder %s1148_s20, %s1148_s20 }
  0x35   :  { %2065 = vst [vmem:[#allocation13_spill] sm:$0xff] %v1452_v18  ;;  %v1455_v14 = vld [vmem:[#allocation8 + $0x178] sm:$0xff]  ;;  %v120_v37 = vadd.f32 %v1448_v16, %v70_v8  ;;  %v1483_v50 = vld [vmem:[#allocation8 + $0x160] sm:$0xff]  ;;  %v1485_v51 = vld [vmem:[#allocation8 + $0x170] sm:$0xff]  ;;  %v119_v8 = vadd.f32 %v1473_v44, %v69_v13  ;;  %v144_v19 = vadd.f32 %v1481_v45, %v94_v15  ;;  %v149_v15 = vmax.f32 %v99_v40, %v1418_v48  ;;  %p1253_p13 = scmp.ne.s32.totalorder %s1148_s20, %s1252_s0  ;;  %p1258_p1 = scmp.lt.s32.totalorder %s1252_s0, %s1252_s0 }
  0x36   :  { %2066 = vst [vmem:[#allocation14_spill] sm:$0xff] %v1455_v14  ;;  %v145_v38 = vadd.f32 %v1450_v17, %v95_v12  ;;  %2067 = vst [vmem:[#allocation15_spill] sm:$0xff] %v1483_v50  ;;  %v207_v57 = vadd.f32 %v191_v33, %v166_v11  ;;  %v1492_v46 = vld [vmem:[#allocation8 + $0x188] sm:$0xff]  ;;  %v1494_v59 = vld [vmem:[#allocation8 + $0x198] sm:$0xff]  ;;  %270 = vrot.lane.b32.xlu1 %v251_v42, %s1285_s1  ;;  %v124_v33 = vmax.f32 %v74_v28, %v108_v47 }
  0x37   :  { %2068 = vst [vmem:[#allocation16_spill] sm:$0xff] %v1485_v51  ;;  %v170_v58 = vadd.f32 %v1452_v18, %v120_v37  ;;  %v1496_v3 = vld [vmem:[#allocation8 + $0x1a8] sm:$0xff]  ;;  %v1505_v12 = vld [vmem:[#allocation8 + $0x1b8] sm:$0xff]  ;;  %v1517_v13 = vld [vmem:[#allocation8 + $0x180] sm:$0xff]  ;;  %v169_v56 = vadd.f32 %v1483_v50, %v119_v8  ;;  %v194_v49 = vadd.f32 %v1485_v51, %v144_v19  ;;  %p1259_p2 = por %p1258_p1, %p1257_p0 }
  0x38   :  { %v195_v41 = vadd.f32 %v1455_v14, %v145_v38  ;;  %v72_v63 = vadd.f32 %v1496_v3, %v1492_v46  ;;  %v1507_v22 = vld [vmem:[#allocation8 + $0x1c8] sm:$0xff]  ;;  %v1509_v11 = vld [vmem:[#allocation8 + $0x1d8] sm:$0xff]  ;;  %v249_v37 = vmul.f32 0.125, %v207_v57  ;;  %v97_v24 = vadd.f32 %v1505_v12, %v1494_v59  ;;  %v1523_v47 = vld [vmem:[#allocation8 + $0x190] sm:$0xff] }
  0x39   :  { %2069 = vst [vmem:[#allocation17_spill] sm:$0xff] %v1507_v22  ;;  %2070 = vst [vmem:[#allocation18_spill] sm:$0xff] %v1509_v11  ;;  %v1513_v29 = vld [vmem:[#allocation8 + $0x1e8] sm:$0xff]  ;;  %v1515_v42 = vld [vmem:[#allocation8 + $0x1f8] sm:$0xff]  ;;  %v210_v51 = vadd.f32 %v194_v49, %v169_v56  ;;  %v126_v49 = vmax.f32 %v76_v7, %v1392_v31  ;;  %p1260_p3 = pnand %p1259_p2, %p1253_p13 }
  0x3a   :  { %v211_v38 = vadd.f32 %v195_v41, %v170_v58  ;;  %2071 = vst [vmem:[#allocation19_spill] sm:$0xff] %v1513_v29  ;;  %v122_v14 = vadd.f32 %v1507_v22, %v72_v63  ;;  %2072 = vst [vmem:[#allocation20_spill] sm:$0xff] %v1523_v47  ;;  %v1525_v28 = vld [vmem:[#allocation8 + $0x1a0] sm:$0xff]  ;;  %v1527_v57 = vld [vmem:[#allocation8 + $0x1b0] sm:$0xff]  ;;  %v101_v58 = vmax.f32 %v1383_v25, %v1390_v30  ;;  %266 = vrot.lane.b32.xlu0 %v249_v37, %s1285_s1 }
  0x3b   :  { %v147_v48 = vadd.f32 %v1509_v11, %v97_v24  ;;  %v71_v40 = vadd.f32 %v1525_v28, %v1517_v13  ;;  %v96_v8 = vadd.f32 %v1527_v57, %v1523_v47  ;;  %v113_v19 = vld [vmem:[#allocation8 + $0x1c0] sm:$0xff]  ;;  %v138_v63 = vld [vmem:[#allocation8 + $0x1d0] sm:$0xff]  ;;  %v174_v25 = vmax.f32 %v124_v33, %v1424_v53 }
  0x3c   :  { %v253_v41 = vmul.f32 0.125, %v211_v38  ;;  %v172_v50 = vadd.f32 %v1513_v29, %v122_v14  ;;  %v1538_v22 = vld [vmem:[#allocation8 + $0x1e0] sm:$0xff]  ;;  %v1540_v18 = vld [vmem:[#allocation8 + $0x1f0] sm:$0xff]  ;;  %v148_v30 = vmax.f32 %v98_v32, %v1374_v20  ;;  %v199_v11 = vmax.f32 %v149_v15, %v1426_v54 }
  0x3d   :  { %v197_v37 = vadd.f32 %v1515_v42, %v147_v48  ;;  %v121_v38 = vadd.f32 %v113_v19, %v71_v40  ;;  %v146_v24 = vadd.f32 %v138_v63, %v96_v8  ;;  %v252_v47 = vmul.f32 0.125, %v210_v51 }
  0x3e   :  { %274 = vrot.lane.b32.xlu1 %v253_v41, %s1285_s1  ;;  %v151_v56 = vmax.f32 %v101_v58, %v1398_v34  ;;  %v78_v14 = vmax.f32 %v1428_v55, %v1436_v61  ;;  %v103_v32 = vmax.f32 %v1434_v60, %v1438_v62  ;;  %v173_v54 = vmax.f32 %v1488_v52, %v1376_v21 }
  0x3f   :  { %v213_v29 = vadd.f32 %v197_v37, %v172_v50  ;;  %v171_v53 = vadd.f32 %v1538_v22, %v121_v38  ;;  %v196_v20 = vadd.f32 %v1540_v18, %v146_v24  ;;  %272 = vrot.lane.b32.xlu0 %v252_v47, %s1285_s1  ;;  %v198_v31 = vmax.f32 %v148_v30, %v1379_v23 }
  0x40   :  { %v2073_v34 = vmax.f32 %v1322_v0, %v1326_v2  ;;  %v2074_v61 = vmax.f32 %v1324_v1, %v1330_v4  ;;  %v77_v60 = vmax.f32 %v1457_v26, %v1469_v39  ;;  %v102_v21 = vmax.f32 %v1459_v27, %v1471_v43 }
  0x41   :  { %v255_v51 = vmul.f32 0.125, %v213_v29  ;;  %v212_v7 = vadd.f32 %v196_v20, %v171_v53  ;;  %v215_v62 = vmax.f32 %v174_v25, %v199_v11  ;;  %v176_v23 = vmax.f32 %v126_v49, %v1400_v35  ;;  %v2075_v27 = vld [vmem:[#allocation20_spill] sm:$0xff]  ;;  %v2079_v11 = vld [vmem:[#allocation18_spill] sm:$0xff]  ;;  %v2082_v58 = vld [vmem:[#allocation19_spill] sm:$0xff] }
  0x42   :  { %v125_v55 = vmax.f32 %v2073_v34, %v1332_v5  ;;  %v150_v50 = vmax.f32 %v2074_v61, %v1334_v6  ;;  %v201_v52 = vmax.f32 %v151_v56, %v1402_v36  ;;  %v128_v0 = vmax.f32 %v78_v14, %v1448_v16 }
  0x43   :  { %278 = vrot.lane.b32.xlu1 %v255_v51, %s1285_s1  ;;  %v254_v2 = vmul.f32 0.125, %v212_v7  ;;  %v153_v1 = vmax.f32 %v103_v32, %v1450_v17  ;;  %v80_v4 = vmax.f32 %v1492_v46, %v1496_v3  ;;  %v105_v5 = vmax.f32 %v1494_v59, %v1505_v12  ;;  %v2076_v46 = vld [vmem:[#allocation13_spill] sm:$0xff] }
  0x44   :  { %v214_v6 = vmax.f32 %v173_v54, %v198_v31  ;;  %v175_v26 = vmax.f32 %v125_v55, %v1354_v9  ;;  %v200_v35 = vmax.f32 %v150_v50, %v1356_v10  ;;  %v127_v36 = vmax.f32 %v77_v60, %v1473_v44  ;;  %v2077_v9 = vld [vmem:[#allocation14_spill] sm:$0xff]  ;;  %v2078_v10 = vld [vmem:[#allocation17_spill] sm:$0xff] }
  0x45   :  { %276 = vrot.lane.b32.xlu0 %v254_v2, %s1285_s1  ;;  %v152_v16 = vmax.f32 %v102_v21, %v1481_v45  ;;  %v79_v17 = vmax.f32 %v1517_v13, %v1525_v28  ;;  %v104_v39 = vmax.f32 %v2075_v27, %v1527_v57  ;;  %v217_v43 = vmax.f32 %v176_v23, %v201_v52  ;;  %v2080_v45 = vld [vmem:[#allocation15_spill] sm:$0xff]  ;;  %v2081_v13 = vld [vmem:[#allocation16_spill] sm:$0xff] }
  0x46   :  { %v178_v59 = vmax.f32 %v128_v0, %v2076_v46  ;;  %v203_v3 = vmax.f32 %v153_v1, %v2077_v9  ;;  %v130_v12 = vmax.f32 %v80_v4, %v2078_v10  ;;  %v155_v33 = vmax.f32 %v105_v5, %v2079_v11 }
  0x47   :  { %307 = vrot.lane.b32.xlu1 %v215_v62, %s1285_s1  ;;  %v216_v44 = vmax.f32 %v175_v26, %v200_v35  ;;  %v177_v29 = vmax.f32 %v127_v36, %v2080_v45  ;;  %v202_v15 = vmax.f32 %v152_v16, %v2081_v13  ;;  %v129_v47 = vmax.f32 %v79_v17, %v113_v19 }
  0x48   :  { %v154_v28 = vmax.f32 %v104_v39, %v138_v63  ;;  %v219_v57 = vmax.f32 %v178_v59, %v203_v3  ;;  %v180_v41 = vmax.f32 %v130_v12, %v2082_v58  ;;  %v205_v48 = vmax.f32 %v155_v33, %v1515_v42 }
  0x49   :  { %305 = vrot.lane.b32.xlu0 %v214_v6, %s1285_s1  ;;  %v218_v40 = vmax.f32 %v177_v29, %v202_v15  ;;  %v179_v8 = vmax.f32 %v129_v47, %v1538_v22  ;;  %v454_v54 = vstv %s1169_s27  ;;  %v1622_v34 = vstv %s1168_s28 }
  0x4a   :  { %v204_v25 = vmax.f32 %v154_v28, %v1540_v18  ;;  %v221_v30 = vmax.f32 %v180_v41, %v205_v48  ;;  %v363_v21 = vstv %s337_s29 }
  0x4b   :  { %311 = vrot.lane.b32.xlu1 %v217_v43, %s1285_s1 }
  0x4c   :  { %v220_v19 = vmax.f32 %v179_v8, %v204_v25 }
  0x4d   :  { %309 = vrot.lane.b32.xlu0 %v216_v44, %s1285_s1 }
  0x4f   :  { %315 = vrot.lane.b32.xlu1 %v219_v57, %s1285_s1 }
  0x51   :  { %313 = vrot.lane.b32.xlu0 %v218_v40, %s1285_s1  ;;  %v552_v40 = vstv %s1170_s3 }
  0x53   :  { %319 = vrot.lane.b32.xlu1 %v221_v30, %s1285_s1 }
  0x55   :  { %317 = vrot.lane.b32.xlu0 %v220_v19, %s1285_s1 }
  0xa3   :  { %v269_v63 = vpop.permute.xlu1 %268 }
  0xa4   :  { %291 = vst.msk [vmem:[#allocation2 + $0x19] sm:$0xff] %vm288_vm2, %v269_v63  ;;  %v265_v42 = vpop.permute.xlu0 %264 }
  0xa5   :  { %289 = vst.msk [vmem:[#allocation2 + $0x1] sm:$0xff] %vm288_vm2, %v265_v42 }
  0xa8   :  { %v271_v22 = vpop.permute.xlu1 %270 }
  0xa9   :  { %292 = vst.msk [vmem:[#allocation2 + $0x21] sm:$0xff] %vm288_vm2, %v271_v22 }
  0xab   :  { %v1643_v17 = vld [vmem:[#allocation2 + $0x18] sm:$0xff] }
  0xac   :  { %v267_v18 = vpop.permute.xlu0 %266  ;;  %v1625_v60 = vld [vmem:[#allocation2] sm:$0xff]  ;;  %v366_v33 = vmul.f32 %v363_v21, %v1643_v17 }
  0xad   :  { %290 = vst.msk [vmem:[#allocation2 + $0x9] sm:$0xff] %vm288_vm2, %v267_v18  ;;  %v364_v5 = vmul.f32 %v363_v21, %v1625_v60 }
  0xb0   :  { %v275_v37 = vpop.permute.xlu1 %274  ;;  %v1637_v36 = vld [vmem:[#allocation2 + $0x20] sm:$0xff] }
  0xb1   :  { %294 = vst.msk [vmem:[#allocation2 + $0x39] sm:$0xff] %vm288_vm2, %v275_v37  ;;  %v273_v38 = vpop.permute.xlu0 %272  ;;  %v367_v43 = vmul.f32 %v363_v21, %v1637_v36 }
  0xb2   :  { %293 = vst.msk [vmem:[#allocation2 + $0x31] sm:$0xff] %vm288_vm2, %v273_v38 }
  0xb4   :  { %v1620_v31 = vld [vmem:[#allocation2 + $0x8] sm:$0xff] }
  0xb5   :  { %v279_v24 = vpop.permute.xlu1 %278  ;;  %v365_v23 = vmul.f32 %v363_v21, %v1620_v31 }
  0xb6   :  { %296 = vst.msk [vmem:[#allocation2 + $0x51] sm:$0xff] %vm288_vm2, %v279_v24 }
  0xb7   :  { %v277_v49 = vpop.permute.xlu0 %276 }
  0xb8   :  { %295 = vst.msk [vmem:[#allocation2 + $0x49] sm:$0xff] %vm288_vm2, %v277_v49 }
  0xb9   :  { %v308_v56 = vpop.permute.xlu1 %307  ;;  %v1648_v10 = vld [vmem:[#allocation2 + $0x38] sm:$0xff]  ;;  %v1650_v12 = vld [vmem:[#allocation2 + $0x30] sm:$0xff] }
  0xba   :  { %330 = vst.msk [vmem:[#allocation3 + $0x9] sm:$0xff] %vm288_vm2, %v308_v56  ;;  %v369_v47 = vmul.f32 %v363_v21, %v1648_v10  ;;  %v368_v48 = vmul.f32 %v363_v21, %v1650_v12 }
  0xbb   :  { %v306_v14 = vpop.permute.xlu0 %305 }
  0xbc   :  { %329 = vst.msk [vmem:[#allocation3 + $0x1] sm:$0xff] %vm288_vm2, %v306_v14 }
  0xbd   :  { %v312_v53 = vpop.permute.xlu1 %311 }
  0xbe   :  { %332 = vst.msk [vmem:[#allocation3 + $0x21] sm:$0xff] %vm288_vm2, %v312_v53 }
  0xbf   :  { %v310_v20 = vpop.permute.xlu0 %309  ;;  %v1657_v44 = vld [vmem:[#allocation2 + $0x50] sm:$0xff]  ;;  %v1659_v45 = vld [vmem:[#allocation2 + $0x48] sm:$0xff] }
  0xc0   :  { %331 = vst.msk [vmem:[#allocation3 + $0x19] sm:$0xff] %vm288_vm2, %v310_v20  ;;  %v371_v25 = vmul.f32 %v363_v21, %v1657_v44  ;;  %v370_v30 = vmul.f32 %v363_v21, %v1659_v45 }
  0xc1   :  { %v316_v32 = vpop.permute.xlu1 %315 }
  0xc2   :  { %334 = vst.msk [vmem:[#allocation3 + $0x39] sm:$0xff] %vm288_vm2, %v316_v32  ;;  %v1687_v32 = vld [vmem:[#allocation3 + $0x9] sm:$0xff] }
  0xc3   :  { %v314_v55 = vpop.permute.xlu0 %313  ;;  %v381_v61 = vld [vmem:[#allocation3 + $0x8] sm:$0xff]  ;;  %v380_v50 = vld [vmem:[#allocation3] sm:$0xff] }
  0xc4   :  { %333 = vst.msk [vmem:[#allocation3 + $0x31] sm:$0xff] %vm288_vm2, %v314_v55  ;;  %v456_v51 = vmul.f32 %v454_v54, %v381_v61  ;;  %v455_v7 = vmul.f32 %v454_v54, %v380_v50  ;;  %v390_v52 = vmul.f32 %v1622_v34, %v381_v61  ;;  %v389_v6 = vmul.f32 %v1622_v34, %v380_v50 }
  0xc5   :  { %v320_v62 = vpop.permute.xlu1 %319  ;;  %v554_v22 = vmul.f32 %v552_v40, %v381_v61  ;;  %v553_v18 = vmul.f32 %v552_v40, %v380_v50  ;;  %v1695_v50 = vld [vmem:[#allocation3 + $0x21] sm:$0xff] }
  0xc6   :  { %473 = vrot.lane.b32.xlu1 %v456_v51, %s1286_s30  ;;  %471 = vrot.lane.b32.xlu0 %v455_v7, %s1286_s30  ;;  %336 = vst.msk [vmem:[#allocation3 + $0x51] sm:$0xff] %vm288_vm2, %v320_v62  ;;  %v1632_v4 = vadd.f32 %v390_v52, %v365_v23  ;;  %v1639_v16 = vadd.f32 %v389_v6, %v364_v5 }
  0xc7   :  { %v318_v0 = vpop.permute.xlu0 %317  ;;  %v383_v2 = vld [vmem:[#allocation3 + $0x20] sm:$0xff]  ;;  %v382_v1 = vld [vmem:[#allocation3 + $0x18] sm:$0xff] }
  0xc8   :  { %335 = vst.msk [vmem:[#allocation3 + $0x49] sm:$0xff] %vm288_vm2, %v318_v0  ;;  %v458_v26 = vmul.f32 %v454_v54, %v383_v2  ;;  %v457_v35 = vmul.f32 %v454_v54, %v382_v1  ;;  %v392_v46 = vmul.f32 %v1622_v34, %v383_v2  ;;  %v391_v59 = vmul.f32 %v1622_v34, %v382_v1  ;;  %v1697_v51 = vld [vmem:[#allocation3 + $0x19] sm:$0xff] }
  0xc9   :  { %v556_v24 = vmul.f32 %v552_v40, %v383_v2  ;;  %v555_v49 = vmul.f32 %v552_v40, %v382_v1  ;;  %v1703_v62 = vld [vmem:[#allocation3 + $0x39] sm:$0xff] }
  0xca   :  { %477 = vrot.lane.b32.xlu1 %v458_v26, %s1286_s30  ;;  %475 = vrot.lane.b32.xlu0 %v457_v35, %s1286_s30  ;;  %v1652_v11 = vadd.f32 %v392_v46, %v367_v43  ;;  %v1661_v15 = vadd.f32 %v391_v59, %v366_v33  ;;  %v405_v26 = vstv %s1160_s6  ;;  %v503_v33 = vstv %s1161_s7 }
  0xcb   :  { %v385_v27 = vld [vmem:[#allocation3 + $0x38] sm:$0xff]  ;;  %v384_v39 = vld [vmem:[#allocation3 + $0x30] sm:$0xff]  ;;  %v407_v35 = vmul.f32 %v405_v26, %v1620_v31  ;;  %v408_v43 = vmul.f32 %v405_v26, %v1643_v17  ;;  %v411_v46 = vmul.f32 %v405_v26, %v1648_v10  ;;  %v410_v59 = vmul.f32 %v405_v26, %v1650_v12 }
  0xcc   :  { %v460_v9 = vmul.f32 %v454_v54, %v385_v27  ;;  %v459_v3 = vmul.f32 %v454_v54, %v384_v39  ;;  %v394_v28 = vmul.f32 %v1622_v34, %v385_v27  ;;  %v393_v57 = vmul.f32 %v1622_v34, %v384_v39  ;;  %v1705_v23 = vld [vmem:[#allocation3 + $0x31] sm:$0xff] }
  0xcd   :  { %v558_v56 = vmul.f32 %v552_v40, %v385_v27  ;;  %v557_v14 = vmul.f32 %v552_v40, %v384_v39  ;;  %v1711_v2 = vld [vmem:[#allocation3 + $0x51] sm:$0xff]  ;;  %v406_v27 = vmul.f32 %v405_v26, %v1625_v60  ;;  %v409_v39 = vmul.f32 %v405_v26, %v1637_v36 }
  0xce   :  { %481 = vrot.lane.b32.xlu1 %v460_v9, %s1286_s30  ;;  %479 = vrot.lane.b32.xlu0 %v459_v3, %s1286_s30  ;;  %v1667_v8 = vadd.f32 %v394_v28, %v369_v47  ;;  %v1673_v19 = vadd.f32 %v393_v57, %v368_v48  ;;  %2083 = vst [vmem:[#allocation20_spill] sm:$0xff] %v1711_v2  ;;  %v1759_v48 = vld [vmem:[#allocation2 + $0x21] sm:$0xff] }
  0xcf   :  { %v387_v29 = vld [vmem:[#allocation3 + $0x50] sm:$0xff]  ;;  %v386_v13 = vld [vmem:[#allocation3 + $0x48] sm:$0xff]  ;;  %v413_v9 = vmul.f32 %v405_v26, %v1657_v44  ;;  %v412_v3 = vmul.f32 %v405_v26, %v1659_v45  ;;  %v507_v47 = vmul.f32 %v503_v33, %v1637_v36  ;;  %v506_v28 = vmul.f32 %v503_v33, %v1643_v17 }
  0xd0   :  { %v462_v58 = vmul.f32 %v454_v54, %v387_v29  ;;  %v461_v41 = vmul.f32 %v454_v54, %v386_v13  ;;  %v396_v63 = vmul.f32 %v1622_v34, %v387_v29  ;;  %v395_v42 = vmul.f32 %v1622_v34, %v386_v13  ;;  %v1689_v34 = vld [vmem:[#allocation3 + $0x1] sm:$0xff]  ;;  %v1713_v1 = vld [vmem:[#allocation3 + $0x49] sm:$0xff] }
  0xd1   :  { %v560_v53 = vmul.f32 %v552_v40, %v387_v29  ;;  %v559_v20 = vmul.f32 %v552_v40, %v386_v13  ;;  %v700_v54 = vstv %s1172_s5  ;;  %2084 = vst [vmem:[#allocation13_spill] sm:$0xff] %v1713_v1  ;;  %v505_v29 = vmul.f32 %v503_v33, %v1620_v31  ;;  %v1751_v36 = vld [vmem:[#allocation2 + $0x9] sm:$0xff]  ;;  %v1761_v40 = vld [vmem:[#allocation2 + $0x19] sm:$0xff] }
  0xd2   :  { %485 = vrot.lane.b32.xlu1 %v462_v58, %s1286_s30  ;;  %483 = vrot.lane.b32.xlu0 %v461_v41, %s1286_s30  ;;  %v1677_v37 = vadd.f32 %v396_v63, %v371_v25  ;;  %v1679_v38 = vadd.f32 %v395_v42, %v370_v30  ;;  %v702_v55 = vmul.f32 %v700_v54, %v1687_v32  ;;  %v651_v17 = vstv %s1163_s8  ;;  %v1753_v41 = vld [vmem:[#allocation2 + $0x1] sm:$0xff]  ;;  %v1767_v25 = vld [vmem:[#allocation2 + $0x39] sm:$0xff]  ;;  %v1769_v30 = vld [vmem:[#allocation2 + $0x31] sm:$0xff] }
  0xd3   :  { %v701_v61 = vmul.f32 %v700_v54, %v1689_v34  ;;  %v704_v7 = vmul.f32 %v700_v54, %v1695_v50  ;;  %v703_v21 = vmul.f32 %v700_v54, %v1697_v51  ;;  %v706_v52 = vmul.f32 %v700_v54, %v1703_v62 }
  0xd4   :  { %v705_v0 = vmul.f32 %v700_v54, %v1705_v23  ;;  %v708_v5 = vmul.f32 %v700_v54, %v1711_v2  ;;  %v707_v6 = vmul.f32 %v700_v54, %v1713_v1  ;;  %v504_v13 = vmul.f32 %v503_v33, %v1625_v60 }
  0xd5   :  { %v509_v57 = vmul.f32 %v503_v33, %v1648_v10  ;;  %v508_v58 = vmul.f32 %v503_v33, %v1650_v12  ;;  %v511_v31 = vmul.f32 %v503_v33, %v1657_v44  ;;  %v510_v60 = vmul.f32 %v503_v33, %v1659_v45 }
  0xd6   :  { %571 = vrot.lane.b32.xlu1 %v554_v22, %s1287_s4  ;;  %569 = vrot.lane.b32.xlu0 %v553_v18, %s1287_s4  ;;  %v653_v10 = vmul.f32 %v651_v17, %v1751_v36  ;;  %v652_v12 = vmul.f32 %v651_v17, %v1753_v41  ;;  %v655_v44 = vmul.f32 %v651_v17, %v1759_v48  ;;  %v1775_v22 = vld [vmem:[#allocation2 + $0x51] sm:$0xff]  ;;  %v1777_v18 = vld [vmem:[#allocation2 + $0x49] sm:$0xff] }
  0xd7   :  { %v654_v45 = vmul.f32 %v651_v17, %v1761_v40  ;;  %v657_v63 = vmul.f32 %v651_v17, %v1767_v25  ;;  %v656_v42 = vmul.f32 %v651_v17, %v1769_v30 }
  0xda   :  { %575 = vrot.lane.b32.xlu1 %v556_v24, %s1287_s4  ;;  %573 = vrot.lane.b32.xlu0 %v555_v49, %s1287_s4  ;;  %v659_v24 = vmul.f32 %v651_v17, %v1775_v22  ;;  %v658_v49 = vmul.f32 %v651_v17, %v1777_v18  ;;  %v1839_v17 = vld [vmem:[#allocation2 + $0x22] sm:$0xff] }
  0xdb   :  { %2087 = vst [vmem:[#allocation18_spill] sm:$0xff] %v1839_v17 }
  0xde   :  { %579 = vrot.lane.b32.xlu1 %v558_v56, %s1287_s4  ;;  %577 = vrot.lane.b32.xlu0 %v557_v14, %s1287_s4  ;;  %v749_v56 = vstv %s1164_s9 }
  0xdf   :  { %v751_v14 = vmul.f32 %v749_v56, %v1751_v36  ;;  %v752_v54 = vmul.f32 %v749_v56, %v1761_v40 }
  0xe2   :  { %583 = vrot.lane.b32.xlu1 %v560_v53, %s1287_s4  ;;  %581 = vrot.lane.b32.xlu0 %v559_v20, %s1287_s4  ;;  %v750_v53 = vmul.f32 %v749_v56, %v1753_v41  ;;  %v753_v20 = vmul.f32 %v749_v56, %v1759_v48 }
  0xe6   :  { %719 = vrot.lane.b32.xlu1 %v702_v55, %s1286_s30  ;;  %717 = vrot.lane.b32.xlu0 %v701_v61, %s1286_s30  ;;  %v755_v55 = vmul.f32 %v749_v56, %v1767_v25  ;;  %v754_v61 = vmul.f32 %v749_v56, %v1769_v30 }
  0xea   :  { %723 = vrot.lane.b32.xlu1 %v704_v7, %s1286_s30  ;;  %721 = vrot.lane.b32.xlu0 %v703_v21, %s1286_s30  ;;  %v757_v7 = vmul.f32 %v749_v56, %v1775_v22  ;;  %v756_v21 = vmul.f32 %v749_v56, %v1777_v18 }
  0xee   :  { %727 = vrot.lane.b32.xlu1 %v706_v52, %s1286_s30  ;;  %725 = vrot.lane.b32.xlu0 %v705_v0, %s1286_s30  ;;  %v798_v52 = vstv %s1173_s10 }
  0xef   :  { %v800_v0 = vmul.f32 %v798_v52, %v1687_v32  ;;  %v806_v33 = vmul.f32 %v798_v52, %v1711_v2 }
  0xf2   :  { %731 = vrot.lane.b32.xlu1 %v708_v5, %s1286_s30  ;;  %729 = vrot.lane.b32.xlu0 %v707_v6, %s1286_s30  ;;  %v799_v5 = vmul.f32 %v798_v52, %v1689_v34 }
  0xf6   :  { %424 = vrot.lane.b32.xlu1 %v407_v35, %s1286_s30  ;;  %422 = vrot.lane.b32.xlu0 %v406_v27, %s1286_s30  ;;  %v802_v35 = vmul.f32 %v798_v52, %v1695_v50  ;;  %v801_v27 = vmul.f32 %v798_v52, %v1697_v51 }
  0xfa   :  { %428 = vrot.lane.b32.xlu1 %v409_v39, %s1286_s30  ;;  %426 = vrot.lane.b32.xlu0 %v408_v43, %s1286_s30 }
  0xfe   :  { %432 = vrot.lane.b32.xlu1 %v411_v46, %s1286_s30  ;;  %430 = vrot.lane.b32.xlu0 %v410_v59, %s1286_s30  ;;  %v804_v46 = vmul.f32 %v798_v52, %v1703_v62  ;;  %v803_v59 = vmul.f32 %v798_v52, %v1705_v23 }
 0x102   :  { %436 = vrot.lane.b32.xlu1 %v413_v9, %s1286_s30  ;;  %434 = vrot.lane.b32.xlu0 %v412_v3, %s1286_s30 }
 0x106   :  { %522 = vrot.lane.b32.xlu1 %v505_v29, %s1287_s4  ;;  %520 = vrot.lane.b32.xlu0 %v504_v13, %s1287_s4  ;;  %v805_v29 = vmul.f32 %v798_v52, %v1713_v1  ;;  %v1827_v13 = vld [vmem:[#allocation2 + $0xa] sm:$0xff] }
 0x107   :  { %2085 = vst [vmem:[#allocation14_spill] sm:$0xff] %v1827_v13  ;;  %v1875_v52 = vld [vmem:[#allocation3 + $0xa] sm:$0xff] }
 0x10a   :  { %526 = vrot.lane.b32.xlu1 %v507_v47, %s1287_s4  ;;  %524 = vrot.lane.b32.xlu0 %v506_v28, %s1287_s4  ;;  %v897_v47 = vstv %s1166_s11  ;;  %v1829_v28 = vld [vmem:[#allocation2 + $0x2] sm:$0xff] }
 0x10b   :  { %2086 = vst [vmem:[#allocation17_spill] sm:$0xff] %v1829_v28 }
 0x10e   :  { %530 = vrot.lane.b32.xlu1 %v509_v57, %s1287_s4  ;;  %528 = vrot.lane.b32.xlu0 %v508_v58, %s1287_s4 }
 0x112   :  { %534 = vrot.lane.b32.xlu1 %v511_v31, %s1287_s4  ;;  %532 = vrot.lane.b32.xlu0 %v510_v60, %s1287_s4  ;;  %v899_v31 = vmul.f32 %v897_v47, %v1827_v13  ;;  %v898_v60 = vmul.f32 %v897_v47, %v1829_v28 }
 0x116   :  { %670 = vrot.lane.b32.xlu1 %v653_v10, %s1286_s30  ;;  %668 = vrot.lane.b32.xlu0 %v652_v12, %s1286_s30  ;;  %v1841_v10 = vld [vmem:[#allocation2 + $0x1a] sm:$0xff] }
 0x117   :  { %2088 = vst [vmem:[#allocation15_spill] sm:$0xff] %v1841_v10 }
 0x11a   :  { %674 = vrot.lane.b32.xlu1 %v655_v44, %s1286_s30  ;;  %672 = vrot.lane.b32.xlu0 %v654_v45, %s1286_s30  ;;  %v901_v45 = vmul.f32 %v897_v47, %v1839_v17 }
 0x11e   :  { %678 = vrot.lane.b32.xlu1 %v657_v63, %s1286_s30  ;;  %676 = vrot.lane.b32.xlu0 %v656_v42, %s1286_s30  ;;  %v900_v63 = vmul.f32 %v897_v47, %v1841_v10  ;;  %v1851_v42 = vld [vmem:[#allocation2 + $0x3a] sm:$0xff] }
 0x122   :  { %682 = vrot.lane.b32.xlu1 %v659_v24, %s1286_s30  ;;  %680 = vrot.lane.b32.xlu0 %v658_v49, %s1286_s30  ;;  %v1853_v24 = vld [vmem:[#allocation2 + $0x32] sm:$0xff] }
 0x126   :  { %768 = vrot.lane.b32.xlu1 %v751_v14, %s1287_s4  ;;  %766 = vrot.lane.b32.xlu0 %v750_v53, %s1287_s4  ;;  %v903_v14 = vmul.f32 %v897_v47, %v1851_v42  ;;  %v902_v53 = vmul.f32 %v897_v47, %v1853_v24 }
 0x12a   :  { %772 = vrot.lane.b32.xlu1 %v753_v20, %s1287_s4  ;;  %770 = vrot.lane.b32.xlu0 %v752_v54, %s1287_s4  ;;  %v1863_v20 = vld [vmem:[#allocation2 + $0x52] sm:$0xff]  ;;  %v1865_v54 = vld [vmem:[#allocation2 + $0x4a] sm:$0xff] }
 0x12e   :  { %776 = vrot.lane.b32.xlu1 %v755_v55, %s1287_s4  ;;  %774 = vrot.lane.b32.xlu0 %v754_v61, %s1287_s4 }
 0x132   :  { %780 = vrot.lane.b32.xlu1 %v757_v7, %s1287_s4  ;;  %778 = vrot.lane.b32.xlu0 %v756_v21, %s1287_s4  ;;  %v905_v7 = vmul.f32 %v897_v47, %v1863_v20  ;;  %v904_v21 = vmul.f32 %v897_v47, %v1865_v54 }
 0x136   :  { %817 = vrot.lane.b32.xlu1 %v800_v0, %s1287_s4  ;;  %815 = vrot.lane.b32.xlu0 %v799_v5, %s1287_s4  ;;  %v946_v0 = vstv %s1175_s12  ;;  %v1877_v5 = vld [vmem:[#allocation3 + $0x2] sm:$0xff] }
 0x138   :  { %v1805_v6 = vpop.permute.xlu1 %473  ;;  %v1807_v26 = vpop.permute.xlu0 %471 }
 0x13a   :  { %821 = vrot.lane.b32.xlu1 %v802_v35, %s1287_s4  ;;  %819 = vrot.lane.b32.xlu0 %v801_v27, %s1287_s4 }
 0x13c   :  { %v1813_v39 = vpop.permute.xlu1 %477  ;;  %v1815_v43 = vpop.permute.xlu0 %475 }
 0x13e   :  { %825 = vrot.lane.b32.xlu1 %v804_v46, %s1287_s4  ;;  %823 = vrot.lane.b32.xlu0 %v803_v59, %s1287_s4  ;;  %v948_v46 = vmul.f32 %v946_v0, %v1875_v52  ;;  %v947_v59 = vmul.f32 %v946_v0, %v1877_v5 }
 0x140   :  { %v1821_v9 = vpop.permute.xlu1 %481  ;;  %v1823_v3 = vpop.permute.xlu0 %479 }
 0x142   :  { %829 = vrot.lane.b32.xlu1 %v806_v33, %s1287_s4  ;;  %827 = vrot.lane.b32.xlu0 %v805_v29, %s1287_s4  ;;  %v1887_v33 = vld [vmem:[#allocation3 + $0x22] sm:$0xff]  ;;  %v1889_v29 = vld [vmem:[#allocation3 + $0x1a] sm:$0xff] }
 0x144   :  { %v1833_v57 = vpop.permute.xlu1 %485  ;;  %v1835_v58 = vpop.permute.xlu0 %483 }
 0x146   :  { %916 = vrot.lane.b32.xlu1 %v899_v31, %s1286_s30  ;;  %914 = vrot.lane.b32.xlu0 %v898_v60, %s1286_s30  ;;  %v950_v60 = vmul.f32 %v946_v0, %v1887_v33 }
 0x148   :  { %v1845_v12 = vpop.permute.xlu1 %571  ;;  %v1847_v44 = vpop.permute.xlu0 %569 }
 0x14a   :  { %920 = vrot.lane.b32.xlu1 %v901_v45, %s1286_s30  ;;  %918 = vrot.lane.b32.xlu0 %v900_v63, %s1286_s30  ;;  %v949_v45 = vmul.f32 %v946_v0, %v1889_v29  ;;  %v1899_v63 = vld [vmem:[#allocation3 + $0x3a] sm:$0xff] }
 0x14c   :  { %v1857_v49 = vpop.permute.xlu1 %575  ;;  %v1859_v56 = vpop.permute.xlu0 %573 }
 0x14e   :  { %924 = vrot.lane.b32.xlu1 %v903_v14, %s1286_s30  ;;  %922 = vrot.lane.b32.xlu0 %v902_v53, %s1286_s30  ;;  %v1901_v14 = vld [vmem:[#allocation3 + $0x32] sm:$0xff] }
 0x150   :  { %v1869_v55 = vpop.permute.xlu1 %579  ;;  %v1871_v61 = vpop.permute.xlu0 %577 }
 0x152   :  { %928 = vrot.lane.b32.xlu1 %v905_v7, %s1286_s30  ;;  %926 = vrot.lane.b32.xlu0 %v904_v21, %s1286_s30  ;;  %v952_v21 = vmul.f32 %v946_v0, %v1899_v63 }
 0x154   :  { %v1881_v35 = vpop.permute.xlu1 %583  ;;  %v1883_v27 = vpop.permute.xlu0 %581 }
 0x156   :  { %965 = vrot.lane.b32.xlu1 %v948_v46, %s1286_s30  ;;  %963 = vrot.lane.b32.xlu0 %v947_v59, %s1286_s30  ;;  %v951_v46 = vmul.f32 %v946_v0, %v1901_v14  ;;  %v1911_v59 = vld [vmem:[#allocation3 + $0x52] sm:$0xff] }
 0x158   :  { %v1893_v47 = vpop.permute.xlu1 %719  ;;  %v1895_v31 = vpop.permute.xlu0 %717 }
 0x159   :  { %2089 = vst [vmem:[#allocation16_spill] sm:$0xff] %v1893_v47  ;;  %2090 = vst [vmem:[#allocation19_spill] sm:$0xff] %v1895_v31  ;;  %v1913_v31 = vld [vmem:[#allocation3 + $0x4a] sm:$0xff] }
 0x15a   :  { %969 = vrot.lane.b32.xlu1 %v950_v60, %s1286_s30  ;;  %967 = vrot.lane.b32.xlu0 %v949_v45, %s1286_s30  ;;  %v954_v45 = vmul.f32 %v946_v0, %v1911_v59 }
 0x15c   :  { %v1905_v53 = vpop.permute.xlu1 %723  ;;  %v1907_v7 = vpop.permute.xlu0 %721 }
 0x15d   :  { %2091 = vst [vmem:[#allocation21_spill] sm:$0xff] %v1905_v53  ;;  %2092 = vst [vmem:[#allocation22_spill] sm:$0xff] %v1907_v7  ;;  %v953_v7 = vmul.f32 %v946_v0, %v1913_v31  ;;  %v995_v53 = vstv %s1167_s13 }
 0x15e   :  { %973 = vrot.lane.b32.xlu1 %v952_v21, %s1286_s30  ;;  %971 = vrot.lane.b32.xlu0 %v951_v46, %s1286_s30  ;;  %v997_v21 = vmul.f32 %v995_v53, %v1827_v13  ;;  %v996_v46 = vmul.f32 %v995_v53, %v1829_v28  ;;  %v999_v0 = vmul.f32 %v995_v53, %v1839_v17 }
 0x15f   :  { %v1000_v17 = vmul.f32 %v995_v53, %v1853_v24 }
 0x160   :  { %v1917_v47 = vpop.permute.xlu1 %727  ;;  %v1919_v60 = vpop.permute.xlu0 %725 }
 0x161   :  { %2093 = vst [vmem:[#allocation23_spill] sm:$0xff] %v1917_v47  ;;  %2094 = vst [vmem:[#allocation24_spill] sm:$0xff] %v1919_v60 }
 0x162   :  { %977 = vrot.lane.b32.xlu1 %v954_v45, %s1286_s30  ;;  %975 = vrot.lane.b32.xlu0 %v953_v7, %s1286_s30  ;;  %v998_v45 = vmul.f32 %v995_v53, %v1841_v10 }
 0x164   :  { %v1925_v1 = vpop.permute.xlu1 %731  ;;  %v1927_v2 = vpop.permute.xlu0 %729 }
 0x165   :  { %2095 = vst [vmem:[#allocation25_spill] sm:$0xff] %v1925_v1  ;;  %2096 = vst [vmem:[#allocation26_spill] sm:$0xff] %v1927_v2  ;;  %v1001_v2 = vmul.f32 %v995_v53, %v1851_v42 }
 0x166   :  { %1014 = vrot.lane.b32.xlu1 %v997_v21, %s1287_s4  ;;  %1012 = vrot.lane.b32.xlu0 %v996_v46, %s1287_s4 }
 0x168   :  { %v425_v60 = vpop.permute.xlu1 %424  ;;  %v423_v47 = vpop.permute.xlu0 %422 }
 0x169   :  { %v447_v7 = vadd.f32 %v425_v60, %v1632_v4  ;;  %v446_v1 = vadd.f32 %v423_v47, %v1639_v16  ;;  %v1002_v60 = vmul.f32 %v995_v53, %v1865_v54 }
 0x16a   :  { %1018 = vrot.lane.b32.xlu1 %v999_v0, %s1287_s4  ;;  %1016 = vrot.lane.b32.xlu0 %v998_v45, %s1287_s4 }
 0x16b   :  { %v496_v28 = vadd.f32 %v1805_v6, %v447_v7  ;;  %v495_v21 = vadd.f32 %v1807_v26, %v446_v1  ;;  %v1003_v26 = vmul.f32 %v995_v53, %v1863_v20 }
 0x16c   :  { %v429_v46 = vpop.permute.xlu1 %428  ;;  %v427_v13 = vpop.permute.xlu0 %426 }
 0x16d   :  { %v449_v10 = vadd.f32 %v429_v46, %v1652_v11  ;;  %v448_v4 = vadd.f32 %v427_v13, %v1661_v15  ;;  %v1044_v15 = vstv %s1176_s14 }
 0x16e   :  { %1022 = vrot.lane.b32.xlu1 %v1001_v2, %s1287_s4  ;;  %1020 = vrot.lane.b32.xlu0 %v1000_v17, %s1287_s4  ;;  %v1046_v17 = vmul.f32 %v1044_v15, %v1875_v52  ;;  %v1048_v7 = vmul.f32 %v1044_v15, %v1887_v33  ;;  %v1047_v46 = vmul.f32 %v1044_v15, %v1889_v29 }
 0x16f   :  { %v498_v16 = vadd.f32 %v1813_v39, %v449_v10  ;;  %v497_v6 = vadd.f32 %v1815_v43, %v448_v4  ;;  %v1045_v10 = vmul.f32 %v1044_v15, %v1877_v5  ;;  %v609_v4 = vstv %s1162_s15 }
 0x170   :  { %v433_v47 = vpop.permute.xlu1 %432  ;;  %v431_v1 = vpop.permute.xlu0 %430 }
 0x171   :  { %v451_v0 = vadd.f32 %v433_v47, %v1667_v8  ;;  %v450_v11 = vadd.f32 %v431_v1, %v1673_v19 }
 0x172   :  { %1026 = vrot.lane.b32.xlu1 %v1003_v26, %s1287_s4  ;;  %1024 = vrot.lane.b32.xlu0 %v1002_v60, %s1287_s4  ;;  %v610_v26 = vmul.f32 %v609_v4, %v1753_v41  ;;  %v612_v41 = vmul.f32 %v609_v4, %v1761_v40 }
 0x173   :  { %v500_v2 = vadd.f32 %v1821_v9, %v451_v0  ;;  %v499_v39 = vadd.f32 %v1823_v3, %v450_v11  ;;  %v1050_v11 = vmul.f32 %v1044_v15, %v1899_v63 }
 0x174   :  { %v437_v43 = vpop.permute.xlu1 %436  ;;  %v435_v13 = vpop.permute.xlu0 %434 }
 0x175   :  { %v453_v8 = vadd.f32 %v437_v43, %v1677_v37  ;;  %v452_v19 = vadd.f32 %v435_v13, %v1679_v38  ;;  %v634_v37 = vstv %s1171_s16 }
 0x176   :  { %1063 = vrot.lane.b32.xlu1 %v1046_v17, %s1287_s4  ;;  %1061 = vrot.lane.b32.xlu0 %v1045_v10, %s1287_s4  ;;  %v635_v43 = vmul.f32 %v634_v37, %v1689_v34 }
 0x177   :  { %v502_v53 = vadd.f32 %v1833_v57, %v453_v8  ;;  %v501_v9 = vadd.f32 %v1835_v58, %v452_v19  ;;  %v611_v58 = vmul.f32 %v609_v4, %v1751_v36  ;;  %v613_v36 = vmul.f32 %v609_v4, %v1759_v48 }
 0x178   :  { %v523_v45 = vpop.permute.xlu1 %522  ;;  %v521_v3 = vpop.permute.xlu0 %520 }
 0x179   :  { %v545_v47 = vadd.f32 %v523_v45, %v496_v28  ;;  %v544_v1 = vadd.f32 %v521_v3, %v495_v21  ;;  %v1049_v28 = vmul.f32 %v1044_v15, %v1901_v14  ;;  %v636_v21 = vmul.f32 %v634_v37, %v1687_v32 }
 0x17a   :  { %1067 = vrot.lane.b32.xlu1 %v1048_v7, %s1287_s4  ;;  %1065 = vrot.lane.b32.xlu0 %v1047_v46, %s1287_s4  ;;  %v638_v3 = vmul.f32 %v634_v37, %v1695_v50  ;;  %v637_v7 = vmul.f32 %v634_v37, %v1697_v51 }
 0x17b   :  { %v594_v38 = vadd.f32 %v1845_v12, %v545_v47  ;;  %v593_v57 = vadd.f32 %v1847_v44, %v544_v1 }
 0x17c   :  { %v527_v60 = vpop.permute.xlu1 %526  ;;  %v525_v0 = vpop.permute.xlu0 %524 }
 0x17d   :  { %v547_v13 = vadd.f32 %v527_v60, %v498_v16  ;;  %v546_v17 = vadd.f32 %v525_v0, %v497_v6  ;;  %v619_v10 = vadd.f32 %v611_v58, %v594_v38  ;;  %v618_v12 = vadd.f32 %v610_v26, %v593_v57 }
 0x17e   :  { %1071 = vrot.lane.b32.xlu1 %v1050_v11, %s1287_s4  ;;  %1069 = vrot.lane.b32.xlu0 %v1049_v28, %s1287_s4  ;;  %v1052_v16 = vmul.f32 %v1044_v15, %v1911_v59  ;;  %v1051_v6 = vmul.f32 %v1044_v15, %v1913_v31 }
 0x17f   :  { %v596_v44 = vadd.f32 %v1857_v49, %v547_v13  ;;  %v595_v8 = vadd.f32 %v1859_v56, %v546_v17  ;;  %v644_v19 = vadd.f32 %v636_v21, %v619_v10  ;;  %v643_v32 = vadd.f32 %v635_v43, %v618_v12  ;;  %v2097_v13 = vld [vmem:[#allocation20_spill] sm:$0xff]  ;;  %v2098_v17 = vld [vmem:[#allocation13_spill] sm:$0xff] }
 0x180   :  { %v531_v45 = vpop.permute.xlu1 %530  ;;  %v529_v34 = vpop.permute.xlu0 %528  ;;  %v615_v49 = vmul.f32 %v609_v4, %v1767_v25  ;;  %v614_v56 = vmul.f32 %v609_v4, %v1769_v30  ;;  %v617_v25 = vmul.f32 %v609_v4, %v1775_v22  ;;  %v616_v30 = vmul.f32 %v609_v4, %v1777_v18  ;;  %v2100_v4 = vld [vmem:[#allocation19_spill] sm:$0xff] }
 0x181   :  { %v549_v46 = vadd.f32 %v531_v45, %v500_v2  ;;  %v548_v48 = vadd.f32 %v529_v34, %v499_v39  ;;  %v621_v47 = vadd.f32 %v613_v36, %v596_v44  ;;  %v620_v40 = vadd.f32 %v612_v41, %v595_v8  ;;  %v2099_v41 = vld [vmem:[#allocation16_spill] sm:$0xff]  ;;  %v2101_v34 = vld [vmem:[#allocation21_spill] sm:$0xff] }
 0x182   :  { %1075 = vrot.lane.b32.xlu1 %v1052_v16, %s1287_s4  ;;  %1073 = vrot.lane.b32.xlu0 %v1051_v6, %s1287_s4  ;;  %v640_v2 = vmul.f32 %v634_v37, %v1703_v62  ;;  %v639_v39 = vmul.f32 %v634_v37, %v1705_v23  ;;  %v642_v62 = vmul.f32 %v634_v37, %v2097_v13  ;;  %v2102_v6 = vld [vmem:[#allocation22_spill] sm:$0xff] }
 0x183   :  { %v598_v1 = vadd.f32 %v1869_v55, %v549_v46  ;;  %v597_v15 = vadd.f32 %v1871_v61, %v548_v48  ;;  %v646_v38 = vadd.f32 %v638_v3, %v621_v47  ;;  %v645_v50 = vadd.f32 %v637_v7, %v620_v40  ;;  %v2103_v46 = vld [vmem:[#allocation23_spill] sm:$0xff]  ;;  %v2104_v47 = vld [vmem:[#allocation24_spill] sm:$0xff] }
 0x184   :  { %v535_v57 = vpop.permute.xlu1 %534  ;;  %v533_v51 = vpop.permute.xlu0 %532  ;;  %v641_v23 = vmul.f32 %v634_v37, %v2098_v17  ;;  %v855_v17 = vstv %s1165_s17 }
 0x185   :  { %v551_v58 = vadd.f32 %v535_v57, %v502_v53  ;;  %v550_v26 = vadd.f32 %v533_v51, %v501_v9  ;;  %v623_v60 = vadd.f32 %v615_v49, %v598_v1  ;;  %v622_v0 = vadd.f32 %v614_v56, %v597_v15  ;;  %v2105_v57 = vld [vmem:[#allocation25_spill] sm:$0xff] }
 0x187   :  { %v600_v55 = vadd.f32 %v1881_v35, %v551_v58  ;;  %v599_v61 = vadd.f32 %v1883_v27, %v550_v26  ;;  %v648_v11 = vadd.f32 %v640_v2, %v623_v60  ;;  %v647_v28 = vadd.f32 %v639_v39, %v622_v0 }
 0x188   :  { %v671_v21 = vpop.permute.xlu1 %670  ;;  %v669_v43 = vpop.permute.xlu0 %668 }
 0x189   :  { %v693_v53 = vadd.f32 %v671_v21, %v644_v19  ;;  %v692_v9 = vadd.f32 %v669_v43, %v643_v32  ;;  %v625_v10 = vadd.f32 %v617_v25, %v600_v55  ;;  %v624_v12 = vadd.f32 %v616_v30, %v599_v61 }
 0x18b   :  { %v650_v36 = vadd.f32 %v642_v62, %v625_v10  ;;  %v649_v22 = vadd.f32 %v641_v23, %v624_v12  ;;  %v742_v18 = vadd.f32 %v2099_v41, %v693_v53  ;;  %v741_v35 = vadd.f32 %v2100_v4, %v692_v9  ;;  %v2107_v10 = vld [vmem:[#allocation14_spill] sm:$0xff] }
 0x18c   :  { %v675_v44 = vpop.permute.xlu1 %674  ;;  %v673_v27 = vpop.permute.xlu0 %672  ;;  %v880_v9 = vstv %s1174_s18  ;;  %v857_v12 = vmul.f32 %v855_v17, %v2107_v10 }
 0x18d   :  { %v695_v8 = vadd.f32 %v675_v44, %v646_v38  ;;  %v694_v45 = vadd.f32 %v673_v27, %v645_v50  ;;  %v2106_v38 = vld [vmem:[#allocation26_spill] sm:$0xff]  ;;  %v882_v44 = vmul.f32 %v880_v9, %v1875_v52  ;;  %v881_v27 = vmul.f32 %v880_v9, %v1877_v5 }
 0x18e   :  { %v861_v52 = vmul.f32 %v855_v17, %v1851_v42  ;;  %v860_v5 = vmul.f32 %v855_v17, %v1853_v24 }
 0x18f   :  { %v744_v16 = vadd.f32 %v2101_v34, %v695_v8  ;;  %v743_v3 = vadd.f32 %v2102_v6, %v694_v45  ;;  %v2109_v8 = vld [vmem:[#allocation18_spill] sm:$0xff] }
 0x190   :  { %v679_v7 = vpop.permute.xlu1 %678  ;;  %v677_v37 = vpop.permute.xlu0 %676  ;;  %v859_v45 = vmul.f32 %v855_v17, %v2109_v8 }
 0x191   :  { %v697_v19 = vadd.f32 %v679_v7, %v648_v11  ;;  %v696_v32 = vadd.f32 %v677_v37, %v647_v28 }
 0x193   :  { %v746_v48 = vadd.f32 %v2103_v46, %v697_v19  ;;  %v745_v40 = vadd.f32 %v2104_v47, %v696_v32  ;;  %v884_v47 = vmul.f32 %v880_v9, %v1887_v33  ;;  %v863_v33 = vmul.f32 %v855_v17, %v1863_v20 }
 0x194   :  { %v683_v49 = vpop.permute.xlu1 %682  ;;  %v681_v56 = vpop.permute.xlu0 %680 }
 0x195   :  { %v699_v1 = vadd.f32 %v683_v49, %v650_v36  ;;  %v698_v15 = vadd.f32 %v681_v56, %v649_v22  ;;  %v2108_v22 = vld [vmem:[#allocation17_spill] sm:$0xff] }
 0x196   :  { %v856_v41 = vmul.f32 %v855_v17, %v2108_v22 }
 0x197   :  { %v748_v51 = vadd.f32 %v2105_v57, %v699_v1  ;;  %v747_v50 = vadd.f32 %v2106_v38, %v698_v15 }
 0x198   :  { %v769_v2 = vpop.permute.xlu1 %768  ;;  %v767_v39 = vpop.permute.xlu0 %766 }
 0x199   :  { %v791_v58 = vadd.f32 %v769_v2, %v742_v18  ;;  %v790_v26 = vadd.f32 %v767_v39, %v741_v35  ;;  %v886_v2 = vmul.f32 %v880_v9, %v1899_v63  ;;  %v885_v39 = vmul.f32 %v880_v9, %v1901_v14 }
 0x19c   :  { %v773_v60 = vpop.permute.xlu1 %772  ;;  %v771_v0 = vpop.permute.xlu0 %770 }
 0x19d   :  { %v793_v25 = vadd.f32 %v773_v60, %v744_v16  ;;  %v792_v30 = vadd.f32 %v771_v0, %v743_v3  ;;  %v2110_v16 = vld [vmem:[#allocation15_spill] sm:$0xff] }
 0x19e   :  { %v858_v6 = vmul.f32 %v855_v17, %v2110_v16 }
 0x1a0   :  { %v777_v55 = vpop.permute.xlu1 %776  ;;  %v775_v61 = vpop.permute.xlu0 %774 }
 0x1a1   :  { %v795_v11 = vadd.f32 %v777_v55, %v746_v48  ;;  %v794_v28 = vadd.f32 %v775_v61, %v745_v40  ;;  %v883_v40 = vmul.f32 %v880_v9, %v1889_v29  ;;  %v862_v29 = vmul.f32 %v855_v17, %v1865_v54 }
 0x1a2   :  { %v888_v55 = vmul.f32 %v880_v9, %v1911_v59  ;;  %v887_v61 = vmul.f32 %v880_v9, %v1913_v31 }
 0x1a4   :  { %v781_v21 = vpop.permute.xlu1 %780  ;;  %v779_v43 = vpop.permute.xlu0 %778 }
 0x1a5   :  { %v797_v13 = vadd.f32 %v781_v21, %v748_v51  ;;  %v796_v62 = vadd.f32 %v779_v43, %v747_v50 }
 0x1a8   :  { %v818_v23 = vpop.permute.xlu1 %817  ;;  %v816_v53 = vpop.permute.xlu0 %815 }
 0x1a9   :  { %v840_v36 = vadd.f32 %v818_v23, %v791_v58  ;;  %v839_v18 = vadd.f32 %v816_v53, %v790_v26 }
 0x1ab   :  { %v865_v4 = vadd.f32 %v857_v12, %v840_v36  ;;  %v864_v35 = vadd.f32 %v856_v41, %v839_v18 }
 0x1ac   :  { %v822_v34 = vpop.permute.xlu1 %821  ;;  %v820_v3 = vpop.permute.xlu0 %819 }
 0x1ad   :  { %v842_v7 = vadd.f32 %v822_v34, %v793_v25  ;;  %v841_v37 = vadd.f32 %v820_v3, %v792_v30  ;;  %v890_v19 = vadd.f32 %v882_v44, %v865_v4  ;;  %v889_v32 = vadd.f32 %v881_v27, %v864_v35 }
 0x1af   :  { %v867_v46 = vadd.f32 %v859_v45, %v842_v7  ;;  %v866_v48 = vadd.f32 %v858_v6, %v841_v37 }
 0x1b0   :  { %v826_v49 = vpop.permute.xlu1 %825  ;;  %v824_v56 = vpop.permute.xlu0 %823 }
 0x1b1   :  { %v844_v1 = vadd.f32 %v826_v49, %v795_v11  ;;  %v843_v15 = vadd.f32 %v824_v56, %v794_v28  ;;  %v892_v57 = vadd.f32 %v884_v47, %v867_v46  ;;  %v891_v51 = vadd.f32 %v883_v40, %v866_v48 }
 0x1b3   :  { %v869_v38 = vadd.f32 %v861_v52, %v844_v1  ;;  %v868_v50 = vadd.f32 %v860_v5, %v843_v15 }
 0x1b4   :  { %v830_v58 = vpop.permute.xlu1 %829  ;;  %v828_v42 = vpop.permute.xlu0 %827 }
 0x1b5   :  { %v846_v26 = vadd.f32 %v830_v58, %v797_v13  ;;  %v845_v60 = vadd.f32 %v828_v42, %v796_v62  ;;  %v894_v24 = vadd.f32 %v886_v2, %v869_v38  ;;  %v893_v0 = vadd.f32 %v885_v39, %v868_v50 }
 0x1b7   :  { %v871_v25 = vadd.f32 %v863_v33, %v846_v26  ;;  %v870_v30 = vadd.f32 %v862_v29, %v845_v60 }
 0x1b8   :  { %v917_v11 = vpop.permute.xlu1 %916  ;;  %v915_v63 = vpop.permute.xlu0 %914 }
 0x1b9   :  { %v896_v28 = vadd.f32 %v888_v55, %v871_v25  ;;  %v895_v14 = vadd.f32 %v887_v61, %v870_v30  ;;  %v939_v44 = vadd.f32 %v917_v11, %v890_v19  ;;  %v938_v27 = vadd.f32 %v915_v63, %v889_v32 }
 0x1bc   :  { %v921_v21 = vpop.permute.xlu1 %920  ;;  %v919_v20 = vpop.permute.xlu0 %918 }
 0x1bd   :  { %v941_v6 = vadd.f32 %v921_v21, %v892_v57  ;;  %v940_v3 = vadd.f32 %v919_v20, %v891_v51 }
 0x1c0   :  { %v925_v43 = vpop.permute.xlu1 %924  ;;  %v923_v23 = vpop.permute.xlu0 %922 }
 0x1c1   :  { %v943_v5 = vadd.f32 %v925_v43, %v894_v24  ;;  %v942_v56 = vadd.f32 %v923_v23, %v893_v0 }
 0x1c4   :  { %v929_v54 = vpop.permute.xlu1 %928  ;;  %v927_v17 = vpop.permute.xlu0 %926 }
 0x1c5   :  { %v945_v29 = vadd.f32 %v929_v54, %v896_v28  ;;  %v944_v42 = vadd.f32 %v927_v17, %v895_v14 }
 0x1c8   :  { %v966_v13 = vpop.permute.xlu1 %965  ;;  %v964_v62 = vpop.permute.xlu0 %963 }
 0x1c9   :  { %v988_v34 = vadd.f32 %v966_v13, %v939_v44  ;;  %v987_v16 = vadd.f32 %v964_v62, %v938_v27 }
 0x1cc   :  { %v970_v53 = vpop.permute.xlu1 %969  ;;  %v968_v10 = vpop.permute.xlu0 %967 }
 0x1cd   :  { %v990_v47 = vadd.f32 %v970_v53, %v941_v6  ;;  %v989_v40 = vadd.f32 %v968_v10, %v940_v3 }
 0x1d0   :  { %v974_v12 = vpop.permute.xlu1 %973  ;;  %v972_v36 = vpop.permute.xlu0 %971 }
 0x1d1   :  { %v992_v38 = vadd.f32 %v974_v12, %v943_v5  ;;  %v991_v50 = vadd.f32 %v972_v36, %v942_v56 }
 0x1d4   :  { %v978_v22 = vpop.permute.xlu1 %977  ;;  %v976_v59 = vpop.permute.xlu0 %975 }
 0x1d5   :  { %v994_v0 = vadd.f32 %v978_v22, %v945_v29  ;;  %v993_v30 = vadd.f32 %v976_v59, %v944_v42 }
 0x1d8   :  { %v1015_v41 = vpop.permute.xlu1 %1014  ;;  %v1013_v31 = vpop.permute.xlu0 %1012 }
 0x1d9   :  { %v1037_v7 = vadd.f32 %v1015_v41, %v988_v34  ;;  %v1036_v37 = vadd.f32 %v1013_v31, %v987_v16 }
 0x1dc   :  { %v1019_v9 = vpop.permute.xlu1 %1018  ;;  %v1017_v18 = vpop.permute.xlu0 %1016 }
 0x1dd   :  { %v1039_v1 = vadd.f32 %v1019_v9, %v990_v47  ;;  %v1038_v15 = vadd.f32 %v1017_v18, %v989_v40 }
 0x1e0   :  { %v1023_v4 = vpop.permute.xlu1 %1022  ;;  %v1021_v35 = vpop.permute.xlu0 %1020 }
 0x1e1   :  { %v1041_v26 = vadd.f32 %v1023_v4, %v992_v38  ;;  %v1040_v60 = vadd.f32 %v1021_v35, %v991_v50 }
 0x1e4   :  { %v1027_v8 = vpop.permute.xlu1 %1026  ;;  %v1025_v45 = vpop.permute.xlu0 %1024 }
 0x1e5   :  { %v1043_v43 = vadd.f32 %v1027_v8, %v994_v0  ;;  %v1042_v23 = vadd.f32 %v1025_v45, %v993_v30 }
 0x1e8   :  { %v1064_v46 = vpop.permute.xlu1 %1063  ;;  %v1062_v48 = vpop.permute.xlu0 %1061 }
 0x1e9   :  { %v1086_v52 = vadd.f32 %v1064_v46, %v1037_v7  ;;  %v1085_v49 = vadd.f32 %v1062_v48, %v1036_v37 }
 0x1eb   :  { %v1094_v19 = vsub.f32 0.0, %v1086_v52  ;;  %v1093_v32 = vsub.f32 0.0, %v1085_v49 }
 0x1ec   :  { %v1068_v2 = vpop.permute.xlu1 %1067  ;;  %v1066_v39 = vpop.permute.xlu0 %1065 }
 0x1ed   :  { %v1103_v57 = vmul.f32 1.442695, %v1094_v19  ;;  %v1101_v51 = vmul.f32 1.442695, %v1093_v32  ;;  %v1088_v33 = vadd.f32 %v1068_v2, %v1039_v1  ;;  %v1087_v58 = vadd.f32 %v1066_v39, %v1038_v15 }
 0x1ef   :  { %1186 = vpow2.f32 %v1103_v57  ;;  %v1096_v25 = vsub.f32 0.0, %v1088_v33  ;;  %v1095_v24 = vsub.f32 0.0, %v1087_v58 }
 0x1f0   :  { %1188 = vpow2.f32 %v1101_v51  ;;  %v1072_v55 = vpop.permute.xlu1 %1071  ;;  %v1070_v61 = vpop.permute.xlu0 %1069 }
 0x1f1   :  { %v1107_v11 = vmul.f32 1.442695, %v1096_v25  ;;  %v1105_v63 = vmul.f32 1.442695, %v1095_v24  ;;  %v1090_v21 = vadd.f32 %v1072_v55, %v1041_v26  ;;  %v1089_v20 = vadd.f32 %v1070_v61, %v1040_v60 }
 0x1f3   :  { %1190 = vpow2.f32 %v1107_v11  ;;  %v1098_v13 = vsub.f32 0.0, %v1090_v21  ;;  %v1097_v28 = vsub.f32 0.0, %v1089_v20 }
 0x1f4   :  { %1192 = vpow2.f32 %v1105_v63  ;;  %v1076_v14 = vpop.permute.xlu1 %1075  ;;  %v1074_v54 = vpop.permute.xlu0 %1073 }
 0x1f5   :  { %v1111_v17 = vmul.f32 1.442695, %v1098_v13  ;;  %v1109_v62 = vmul.f32 1.442695, %v1097_v28  ;;  %v1092_v53 = vadd.f32 %v1076_v14, %v1043_v43  ;;  %v1091_v10 = vadd.f32 %v1074_v54, %v1042_v23 }
 0x1f7   :  { %1194 = vpow2.f32 %v1111_v17  ;;  %v1100_v12 = vsub.f32 0.0, %v1092_v53  ;;  %v1099_v36 = vsub.f32 0.0, %v1091_v10 }
 0x1f8   :  { %1196 = vpow2.f32 %v1109_v62 }
 0x1f9   :  { %v1187_v22 = vpop.eup %1186  ;;  %v1115_v59 = vmul.f32 1.442695, %v1100_v12  ;;  %v1113_v9 = vmul.f32 1.442695, %v1099_v36 }
 0x1fa   :  { %v1189_v41 = vpop.eup %1188  ;;  %v1118_v31 = vadd.f32 1.0, %v1187_v22 }
 0x1fb   :  { %v1117_v18 = vadd.f32 1.0, %v1189_v41  ;;  %1198 = vpow2.f32 %v1115_v59 }
 0x1fc   :  { %1200 = vrcp.f32 %v1118_v31 }
 0x1fd   :  { %v1191_v4 = vpop.eup %1190  ;;  %1202 = vrcp.f32 %v1117_v18 }
 0x1fe   :  { %v1193_v35 = vpop.eup %1192  ;;  %v1120_v44 = vadd.f32 1.0, %v1191_v4  ;;  %1204 = vpow2.f32 %v1113_v9 }
 0x1ff   :  { %v1119_v27 = vadd.f32 1.0, %v1193_v35 }
 0x200   :  { %1206 = vrcp.f32 %v1120_v44 }
 0x201   :  { %v1195_v8 = vpop.eup %1194  ;;  %1208 = vrcp.f32 %v1119_v27 }
 0x202   :  { %v1197_v45 = vpop.eup %1196  ;;  %v1122_v34 = vadd.f32 1.0, %v1195_v8 }
 0x203   :  { %v1121_v16 = vadd.f32 1.0, %v1197_v45 }
 0x204   :  { %1210 = vrcp.f32 %v1122_v34 }
 0x205   :  { %v1199_v6 = vpop.eup %1198  ;;  %1212 = vrcp.f32 %v1121_v16 }
 0x206   :  { %v1201_v3 = vpop.eup %1200  ;;  %v1124_v7 = vadd.f32 1.0, %v1199_v6 }
 0x207   :  { %v1203_v37 = vpop.eup %1202  ;;  %1135 = vst.msk [vmem:[#allocation9 + $0x8] sm:$0xff] %vm1133_vm3, %v1201_v3 }
 0x208   :  { %v1205_v46 = vpop.eup %1204  ;;  %1134 = vst.msk [vmem:[#allocation9] sm:$0xff] %vm1133_vm3, %v1203_v37  ;;  %1214 = vrcp.f32 %v1124_v7 }
 0x209   :  { %v1123_v48 = vadd.f32 1.0, %v1205_v46 }
 0x20a   :  { %v1207_v47 = vpop.eup %1206 }
 0x20b   :  { %v1209_v40 = vpop.eup %1208  ;;  %1137 = vst.msk [vmem:[#allocation9 + $0x18] sm:$0xff] %vm1133_vm3, %v1207_v47  ;;  %1216 = vrcp.f32 %v1123_v48 }
 0x20c   :  { %1136 = vst.msk [vmem:[#allocation9 + $0x10] sm:$0xff] %vm1133_vm3, %v1209_v40 }
 0x20e   :  { %v1211_v52 = vpop.eup %1210 }
 0x20f   :  { %v1213_v49 = vpop.eup %1212  ;;  %1139 = vst.msk [vmem:[#allocation9 + $0x28] sm:$0xff] %vm1133_vm3, %v1211_v52 }
 0x210   :  { %1138 = vst.msk [vmem:[#allocation9 + $0x20] sm:$0xff] %vm1133_vm3, %v1213_v49 }
 0x212   :  { %v1215_v5 = vpop.eup %1214 }
 0x213   :  { %1141 = vst.msk [vmem:[#allocation9 + $0x38] sm:$0xff] %vm1133_vm3, %v1215_v5 }
 0x215   :  { %v1217_v56 = vpop.eup %1216 }
 0x216   :  { %1140 = vst.msk [vmem:[#allocation9 + $0x30] sm:$0xff] %vm1133_vm3, %v1217_v56 }
 0x217   :  { %1263 = shalt.err (!%p1260_p3)
}
 0x218   :  { %s1264_s25 = scalar_lea.hbm %s2050_s2, 1024 }
 0x219   :  { %p1265_p4 = scmp.ne.s32.totalorder %s2050_s2, %s1264_s25  ;;  %p1268_p5 = scmp.lt.u32.totalorder %s1264_s25, %s2050_s2 }
 0x21b   :  { %p1270_p6 = pnand %p1268_p5, %p1265_p4 }
 0x21d   :  { %1273 = shalt.err (!%p1270_p6)
}
 0x21e   :  { %1153 = dma.vmem_to_hbm [thread:$0]  %s1148_s20, 1024, %s2050_s2, [#allocation6], %s1282_s23, %s1282_s23, %s1283_s24  }
 0x21f   :  { %1278 = dma.done.wait [#allocation6], 1024  }
 0x220   :  { %1279 = vsyncadd [#allocation6], 4294966272 }
 0x221   :  { %1157 = vsyncpa [#allocation5], 1 }
 0x222   :  { %1158 = vsyncpa [#allocation6], 1 }
 0x223   :  { %1159 = vsyncpa [#allocation7], 1 }

</bundles_post_ra>
